<compile_context>
chip_gen: v7x
topology: tpu7x:2x2x1
jax: 0.10.0
libtpu: 0.0.40
codegen_flags: <defaults>
</compile_context>

<pallas_src>
import functools
import numpy as np

import jax
import jax.numpy as jnp
from jax.experimental import pallas as pl
from jax.experimental.pallas import tpu as pltpu

_VMEM_LIMIT = 48 * 1024 * 1024
_PARAMS_NOGRID = pltpu.CompilerParams(vmem_limit_bytes=_VMEM_LIMIT)
_PARAMS_NPAR = pltpu.CompilerParams(dimension_semantics=("parallel",),
                                    vmem_limit_bytes=_VMEM_LIMIT)
_PARAMS_ARB = pltpu.CompilerParams(dimension_semantics=("arbitrary",),
                                   vmem_limit_bytes=_VMEM_LIMIT)


def _full_spec(shape):
    zeros = (0,) * len(shape)
    return pl.BlockSpec(shape, lambda *_: zeros)


# ----------------------------------------------------------------------------
# In-kernel helpers
# ----------------------------------------------------------------------------
def _ln(x, g, b, eps):
    mu = jnp.mean(x, axis=-1, keepdims=True)
    xc = x - mu
    var = jnp.mean(xc * xc, axis=-1, keepdims=True)
    return xc * jax.lax.rsqrt(var + eps) * g + b


def _attention_block(q, k, v, nheads, sq, sk, scale):
    """softmax(QK^T*scale)V per (attention-batch, head); all batches at once via a
    block-diagonal mask so every matmul stays full-row / lane-aligned."""
    M, E = q.shape
    Mk = k.shape[0]
    d = E // nheads
    row_b = jax.lax.broadcasted_iota(jnp.int32, (M, Mk), 0) // sq
    col_b = jax.lax.broadcasted_iota(jnp.int32, (M, Mk), 1) // sk
    mask = row_b == col_b
    outs = []
    for h in range(nheads):
        qh = q[:, h * d:(h + 1) * d]
        kh = k[:, h * d:(h + 1) * d]
        vh = v[:, h * d:(h + 1) * d]
        s = jax.lax.dot_general(qh, kh, (((1,), (1,)), ((), ())),
                                preferred_element_type=jnp.float32) * scale
        s = jnp.where(mask, s, jnp.float32(-1e30))
        s = s - jnp.max(s, axis=-1, keepdims=True)
        p = jnp.exp(s)
        p = p * pl.reciprocal(jnp.sum(p, axis=-1, keepdims=True), approx=True)
        outs.append(jnp.dot(p, vh, preferred_element_type=jnp.float32))
    return jnp.concatenate(outs, axis=-1)


# ----------------------------------------------------------------------------
# Generic linear (output-N parallel grid)
# ----------------------------------------------------------------------------
def _linear_kernel(x_ref, w_ref, b_ref, o_ref, *, activation):
    y = jnp.dot(x_ref[...].astype(w_ref.dtype), w_ref[...],
                preferred_element_type=jnp.float32) + b_ref[...]
    if activation == "relu":
        y = jnp.maximum(y, 0.0)
    o_ref[...] = y


@functools.partial(jax.jit, static_argnames=("activation",))
def linear(x, w, b, activation=None):
    M, K = x.shape
    N = w.shape[1]
    tn = 512 if (N % 512 == 0) else N
    return pl.pallas_call(
        functools.partial(_linear_kernel, activation=activation),
        out_shape=jax.ShapeDtypeStruct((M, N), jnp.float32),
        grid=(N // tn,),
        in_specs=[pl.BlockSpec((M, K), lambda j: (0, 0)),
                  pl.BlockSpec((K, tn), lambda j: (0, j)),
                  pl.BlockSpec((1, tn), lambda j: (0, j))],
        out_specs=pl.BlockSpec((M, tn), lambda j: (0, j)),
        compiler_params=_PARAMS_NPAR,
    )(x, w, b.reshape(1, N))


# ----------------------------------------------------------------------------
# GRU recurrence (whole layer, w_hh VMEM-resident)
# ----------------------------------------------------------------------------
def _gru_seq_kernel(gi_ref, whh_ref, bhh_ref, o_ref, *, T, H):
    whh = whh_ref[...]
    bhh = bhh_ref[...]
    Bn = gi_ref.shape[1]
    h = jnp.zeros((Bn, H), jnp.float32)
    for t in range(T):  # static unroll, T=8
        gi = gi_ref[t]                                    # (B, 3H): x@W_ih + b_ih
        gh = jnp.dot(h.astype(whh.dtype), whh, preferred_element_type=jnp.float32) + bhh
        r = jax.nn.sigmoid(gi[:, :H] + gh[:, :H])
        z = jax.nn.sigmoid(gi[:, H:2 * H] + gh[:, H:2 * H])
        n = jnp.tanh(gi[:, 2 * H:] + r * gh[:, 2 * H:])
        h = (1.0 - z) * n + z * h
        o_ref[t] = h


@jax.jit
def gru_seq(gi, w_hh, b_hh):
    T, Bn, H3 = gi.shape
    H = H3 // 3
    return pl.pallas_call(
        functools.partial(_gru_seq_kernel, T=T, H=H),
        out_shape=jax.ShapeDtypeStruct((T, Bn, H), jnp.float32),
        in_specs=[_full_spec((T, Bn, H3)),
                  _full_spec((H, H3)),
                  _full_spec((1, H3))],
        out_specs=_full_spec((T, Bn, H)),
        compiler_params=_PARAMS_NOGRID,
    )(gi, w_hh, b_hh.reshape(1, H3))


# ----------------------------------------------------------------------------
# Stacked TransformerEncoder (all layers in one pallas_call, grid over layers)
# ----------------------------------------------------------------------------
def _encoder_stack_kernel(x_ref, wqkv_ref, bqkv_ref, wo_ref, bo_ref,
                          w1_ref, b1_ref, w2_ref, b2_ref,
                          ln1g_ref, ln1b_ref, ln2g_ref, ln2b_ref,
                          o_ref, x_sc, *, nheads, seq, scale, eps):
    l = pl.program_id(0)

    @pl.when(l == 0)
    def _():
        x_sc[...] = x_ref[...]

    x = x_sc[...]
    wdt = wqkv_ref.dtype
    E = x.shape[-1]
    qkv = jnp.dot(x.astype(wdt), wqkv_ref[...],
                  preferred_element_type=jnp.float32) + bqkv_ref[...]
    q = qkv[:, :E]
    k = qkv[:, E:2 * E]
    v = qkv[:, 2 * E:]
    attn = _attention_block(q, k, v, nheads, seq, seq, scale)
    attn = jnp.dot(attn.astype(wdt), wo_ref[...],
                   preferred_element_type=jnp.float32) + bo_ref[...]
    y = _ln(x + attn, ln1g_ref[...], ln1b_ref[...], eps)
    h1 = jnp.maximum(jnp.dot(y.astype(wdt), w1_ref[...],
                             preferred_element_type=jnp.float32) + b1_ref[...], 0.0)
    h2 = jnp.dot(h1.astype(wdt), w2_ref[...],
                 preferred_element_type=jnp.float32) + b2_ref[...]
    out = _ln(y + h2, ln2g_ref[...], ln2b_ref[...], eps)
    x_sc[...] = out

    @pl.when(l == pl.num_programs(0) - 1)
    def _():
        o_ref[...] = out


@functools.partial(jax.jit, static_argnames=("nheads", "seq"))
def transformer_encoder_stack(x, p, *, nheads, seq):
    """All post-norm TransformerEncoderLayers in ONE pallas_call: per-layer weight tiles
    are pipelined across the layer grid while the activation lives in a VMEM scratch."""
    M, E = x.shape
    L = p["wqkv"].shape[0]
    DFF = p["w1"].shape[2]
    scale = 1.0 / float(np.sqrt(E // nheads))

    def wspec(d1, d2):
        return pl.BlockSpec((None, d1, d2), lambda l: (l, 0, 0))

    return pl.pallas_call(
        functools.partial(_encoder_stack_kernel, nheads=nheads, seq=seq,
                          scale=scale, eps=1e-5),
        out_shape=jax.ShapeDtypeStruct((M, E), jnp.float32),
        grid=(L,),
        in_specs=[pl.BlockSpec((M, E), lambda l: (0, 0)),
                  wspec(E, 3 * E), wspec(1, 3 * E),
                  wspec(E, E), wspec(1, E),
                  wspec(E, DFF), wspec(1, DFF),
                  wspec(DFF, E), wspec(1, E),
                  wspec(1, E), wspec(1, E), wspec(1, E), wspec(1, E)],
        out_specs=pl.BlockSpec((M, E), lambda l: (0, 0)),
        scratch_shapes=[pltpu.VMEM((M, E), jnp.float32)],
        compiler_params=_PARAMS_ARB,
    )(x, p["wqkv"], p["bqkv"], p["wo"], p["bo"],
      p["w1"], p["b1"], p["w2"], p["b2"],
      p["ln1_g"], p["ln1_b"], p["ln2_g"], p["ln2_b"])


# ----------------------------------------------------------------------------
# Whole fusion stage (shared-weight self/cross MHA + FFN loop + final LNs) in one kernel
# ----------------------------------------------------------------------------
def _fusion_stage_kernel(pc_ref, img_ref, pcres_ref, imgres_ref,
                         swqkv_ref, sbqkv_ref, swo_ref, sbo_ref,
                         cwq_ref, cwk_ref, cwv_ref, cwo_ref,
                         cbq_ref, cbk_ref, cbv_ref, cbo_ref,
                         w1_ref, b1_ref, w2_ref, b2_ref,
                         lng_ref, lnb_ref, o_ref,
                         *, nheads, seq, scale, n_loop, eps):
    E = pc_ref.shape[-1]
    wdt = swqkv_ref.dtype

    def self_mha(x):
        qkv = jnp.dot(x.astype(wdt), swqkv_ref[...],
                      preferred_element_type=jnp.float32) + sbqkv_ref[...]
        a = _attention_block(qkv[:, :E], qkv[:, E:2 * E], qkv[:, 2 * E:],
                             nheads, seq, seq, scale)
        return jnp.dot(a.astype(wdt), swo_ref[...],
                       preferred_element_type=jnp.float32) + sbo_ref[...]

    def cross_mha(q_in, k_in, v_in):
        q = jnp.dot(q_in.astype(wdt), cwq_ref[...],
                    preferred_element_type=jnp.float32) + cbq_ref[...]
        k = jnp.dot(k_in.astype(wdt), cwk_ref[...],
                    preferred_element_type=jnp.float32) + cbk_ref[...]
        v = jnp.dot(v_in.astype(wdt), cwv_ref[...],
                    preferred_element_type=jnp.float32) + cbv_ref[...]
        a = _attention_block(q, k, v, nheads, seq, seq, scale)
        return jnp.dot(a.astype(wdt), cwo_ref[...],
                       preferred_element_type=jnp.float32) + cbo_ref[...]

    def ffn(x):
        h = jnp.maximum(jnp.dot(x.astype(wdt), w1_ref[...],
                                preferred_element_type=jnp.float32) + b1_ref[...], 0.0)
        return jnp.dot(h.astype(wdt), w2_ref[...],
                       preferred_element_type=jnp.float32) + b2_ref[...]

    pc = self_mha(pc_ref[...])
    img = self_mha(img_ref[...])
    fusion = ffn(cross_mha(pc, img, img))
    for _ in range(n_loop):
        pc = self_mha(pc)
        img = self_mha(img)
        fusion = ffn(cross_mha(pc, fusion, img))

    g = lng_ref[...]
    b = lnb_ref[...]
    fusion = _ln(fusion + pcres_ref[...], g, b, eps)
    fusion = _ln(ffn(fusion) + fusion, g, b, eps)
    o_ref[...] = fusion + pcres_ref[...] + imgres_ref[...]


@functools.partial(jax.jit, static_argnames=("nheads", "seq", "n_loop"))
def fusion_stage(pc, img, pc_res, img_res, p, *, nheads, seq, n_loop):
    M, E = pc.shape
    DFF = p["ffn_w1"].shape[1]
    scale = 1.0 / float(np.sqrt(E // nheads))
    vec = lambda v: v.reshape(1, -1)
    return pl.pallas_call(
        functools.partial(_fusion_stage_kernel, nheads=nheads, seq=seq,
                          scale=scale, n_loop=n_loop, eps=1e-6),
        out_shape=jax.ShapeDtypeStruct((M, E), jnp.float32),
        in_specs=[_full_spec((M, E))] * 4 + [
            _full_spec((E, 3 * E)), _full_spec((1, 3 * E)),
            _full_spec((E, E)), _full_spec((1, E)),
            _full_spec((E, E)), _full_spec((E, E)), _full_spec((E, E)), _full_spec((E, E)),
            _full_spec((1, E)), _full_spec((1, E)), _full_spec((1, E)), _full_spec((1, E)),
            _full_spec((E, DFF)), _full_spec((1, DFF)),
            _full_spec((DFF, E)), _full_spec((1, E)),
            _full_spec((1, E)), _full_spec((1, E))],
        out_specs=_full_spec((M, E)),
        compiler_params=_PARAMS_NOGRID,
    )(pc, img, pc_res, img_res,
      p["self_wqkv"], vec(p["self_bqkv"]), p["self_wo"], vec(p["self_bo"]),
      p["cross_wq"], p["cross_wk"], p["cross_wv"], p["cross_wo"],
      vec(p["cross_bq"]), vec(p["cross_bk"]), vec(p["cross_bv"]), vec(p["cross_bo"]),
      p["ffn_w1"], vec(p["ffn_b1"]), p["ffn_w2"], vec(p["ffn_b2"]),
      vec(p["ln_g"]), vec(p["ln_b"]))


# ----------------------------------------------------------------------------
# Regressor: all 3 iterations fused, packed (pose|shape|cam) state
# ----------------------------------------------------------------------------
def _regressor_kernel(x_ref, init_ref, wx_ref, b1_ref, wpsc_ref,
                      fc2w_ref, b2_ref, wdec_ref, bdec_ref, o_ref, *, n_iter):
    wdt = wx_ref.dtype
    N = x_ref.shape[0]
    # fc1(x-part) is loop-invariant: compute once, reuse across iterations.
    base = jnp.dot(x_ref[...].astype(wdt), wx_ref[...],
                   preferred_element_type=jnp.float32) + b1_ref[...]
    psc = jnp.broadcast_to(init_ref[...], (N, init_ref.shape[1]))
    for _ in range(n_iter):
        h = base + jnp.dot(psc.astype(wdt), wpsc_ref[...],
                           preferred_element_type=jnp.float32)
        h = jnp.dot(h.astype(wdt), fc2w_ref[...],
                    preferred_element_type=jnp.float32) + b2_ref[...]
        psc = psc + jnp.dot(h.astype(wdt), wdec_ref[...],
                            preferred_element_type=jnp.float32) + bdec_ref[...]
    o_ref[...] = psc


@functools.partial(jax.jit, static_argnames=("n_iter",))
def regressor_fused(x, P, n_iter):
    N, E = x.shape
    PS = P["w_psc"].shape[0]
    H = P["fc2_w"].shape[0]
    return pl.pallas_call(
        functools.partial(_regressor_kernel, n_iter=n_iter),
        out_shape=jax.ShapeDtypeStruct((N, PS), jnp.float32),
        in_specs=[_full_spec((N, E)), _full_spec((1, PS)),
                  _full_spec((E, H)), _full_spec((1, H)),
                  _full_spec((PS, H)),
                  _full_spec((H, H)), _full_spec((1, H)),
                  _full_spec((H, PS)), _full_spec((1, PS))],
        out_specs=_full_spec((N, PS)),
        compiler_params=_PARAMS_NOGRID,
    )(x, P["init_psc"], P["w_x"], P["fc1_b"].reshape(1, -1), P["w_psc"],
      P["fc2_w"], P["fc2_b"].reshape(1, -1), P["w_dec"], P["b_dec"].reshape(1, -1))


# ----------------------------------------------------------------------------
# Model pieces (glue in plain JAX, hot paths via the fused kernels above)
# ----------------------------------------------------------------------------
def gru_layer(x_seq, p):
    T, Bn, F = x_seq.shape
    H = p["w_hh"].shape[0]
    gi = linear(x_seq.reshape(T * Bn, F), p["w_ih"], p["b_ih"]).reshape(T, Bn, 3 * H)
    return gru_seq(gi, p["w_hh"], p["b_hh"])


def temporal_encoder(x, P):
    B, T, F = x.shape                                     # (batch, seq, 2048)
    xs = jnp.transpose(x, (1, 0, 2))                      # (T, B, 2048)
    h = xs
    for lp in P["gru_layers"]:
        h = gru_layer(h, lp)                              # (T, B, 1024)
    y = jax.nn.relu(h)
    y = linear(y.reshape(T * B, y.shape[-1]), P["lin_w"], P["lin_b"]).reshape(T, B, F)
    y = y + xs                                            # use_residual, dim 2048
    return jnp.transpose(y, (1, 0, 2))                    # (B, T, 2048)


# ------------------------- SMPL-style glue (plain JAX) -----------------------
def rot6d_to_rotmat(x):
    x = x.reshape(-1, 3, 2)
    a1, a2 = x[:, :, 0], x[:, :, 1]
    b1 = a1 / jnp.maximum(jnp.linalg.norm(a1, axis=-1, keepdims=True), 1e-12)
    proj = jnp.sum(b1 * a2, axis=-1, keepdims=True)
    b2u = a2 - proj * b1
    b2 = b2u / jnp.maximum(jnp.linalg.norm(b2u, axis=-1, keepdims=True), 1e-12)
    b3 = jnp.cross(b1, b2)
    return jnp.stack([b1, b2, b3], axis=-1)


def rotation_matrix_to_angle_axis(R):
    trace = R[:, 0, 0] + R[:, 1, 1] + R[:, 2, 2]
    cos = jnp.clip((trace - 1.0) / 2.0, -1.0 + 1e-7, 1.0 - 1e-7)
    angle = jnp.arccos(cos)
    axis = jnp.stack([R[:, 2, 1] - R[:, 1, 2],
                      R[:, 0, 2] - R[:, 2, 0],
                      R[:, 1, 0] - R[:, 0, 1]], axis=-1)
    axis = axis / jnp.maximum(jnp.linalg.norm(axis, axis=-1, keepdims=True), 1e-8)
    return axis * angle[:, None]


def projection(pred_joints, pred_camera):
    focal = 5000.0
    t = jnp.stack([pred_camera[:, 1],
                   pred_camera[:, 2],
                   2.0 * focal / (224.0 * pred_camera[:, 0] + 1e-9)], axis=-1)
    pts = pred_joints + t[:, None, :]                     # rotation = identity
    proj = pts / pts[:, :, 2:3]
    kp = jnp.stack([focal * proj[:, :, 0], focal * proj[:, :, 1]], axis=-1)  # camera_center = 0
    return kp / (224.0 / 2.0)


def regressor(x, P, n_iter=3):
    N = x.shape[0]
    npose = 24 * 6
    psc = regressor_fused(x, P, n_iter=n_iter)            # (N, 256): pose|shape|cam|pad
    pred_pose = psc[:, :npose]
    pred_shape = psc[:, npose:npose + 10]
    pred_cam = psc[:, npose + 10:npose + 13]
    pred_rotmat = rot6d_to_rotmat(pred_pose).reshape(N, 24, 3, 3)
    # TODO(synk): the real SMPL body model / joint regressor are file-based assets; using a
    # deterministic synthetic linear map rotmat(N,216)->joints(N,24,3) as a stand-in.
    pred_joints = jnp.tanh(pred_rotmat.reshape(N, 24 * 9) @ P["smpl_joint_w"]).reshape(N, 24, 3)
    pred_kp_2d = projection(pred_joints, pred_cam)
    pose = rotation_matrix_to_angle_axis(pred_rotmat.reshape(-1, 3, 3)).reshape(N, 72)
    theta = jnp.concatenate([pred_cam, pose, pred_shape], axis=1)
    return {"theta": theta, "kp_2d": pred_kp_2d, "kp_3d": pred_joints, "rotmat": pred_rotmat}


# ----------------------------------------------------------------------------
# Full VIBE_eventpc forward
# ----------------------------------------------------------------------------
def vibe_eventpc_forward(x, pc_feature, P):
    B, T = x.shape[:2]
    E = pc_feature.shape[-1]
    nheads = 4
    seq = B                                               # PyTorch seq-first: axis0 = "seq"

    def to_attn(z):      # (B,T,E) -> (T*B,E), rows (t,b): each attention batch contiguous
        return jnp.transpose(z, (1, 0, 2)).reshape(T * B, E)

    def from_attn(z):    # (T*B,E) -> (B*T,E), rows (b,t) like PyTorch .reshape(-1,E)
        return jnp.transpose(z.reshape(T, B, E), (1, 0, 2)).reshape(B * T, E)

    feature3 = temporal_encoder(x, P["encoder"])          # (B, T, 2048)
    feature = feature3.reshape(-1, 2048)                  # (B*T, 2048)
    img_feature = linear(feature, P["fc_w"], P["fc_b"])   # (B*T, 1024)

    pc = to_attn(pc_feature)
    img = to_attn(img_feature.reshape(B, T, E))
    pc_res, img_res = pc, img

    pc_t = transformer_encoder_stack(pc, P["trans2"], nheads=nheads, seq=seq)    # 12 layers
    img_t = transformer_encoder_stack(img, P["trans1"], nheads=nheads, seq=seq)  # 6 layers

    fusion = fusion_stage(pc_t, img_t, pc_res, img_res, P["fusion"],
                          nheads=nheads, seq=seq, n_loop=5)
    fusion = from_attn(fusion)                            # (B*T, 1024)

    smpl_output = regressor(fusion, P["regressor"], n_iter=3)
    return feature, smpl_output


# ----------------------------------------------------------------------------
# Deterministic parameter construction (bf16 weights, f32 biases / LN params)
# ----------------------------------------------------------------------------
class KeyGen:
    def __init__(self, key):
        self.key = key

    def __call__(self):
        self.key, sub = jax.random.split(self.key)
        return sub


def build_params(key):
    kg = KeyGen(key)
    E, DFF, H = 1024, 2048, 1024
    npose = 24 * 6
    PS = 256                     # pose(144)+shape(10)+cam(3)=157, lane-padded to 256
    bf16 = jnp.bfloat16

    def uni(shape, lim):
        return jax.random.uniform(kg(), shape, jnp.float32, -lim, lim)

    def lin(fan_in, fan_out):
        lim = 1.0 / np.sqrt(fan_in)
        return uni((fan_in, fan_out), lim).astype(bf16), uni((fan_out,), lim)

    def xavier(fan_in, fan_out, gain=1.0):
        a = gain * np.sqrt(6.0 / (fan_in + fan_out))
        return uni((fan_in, fan_out), a)

    def gru(input_size):
        lim = 1.0 / np.sqrt(H)
        return {"w_ih": uni((input_size, 3 * H), lim).astype(bf16),
                "b_ih": uni((3 * H,), lim),
                "w_hh": uni((H, 3 * H), lim).astype(bf16),
                "b_hh": uni((3 * H,), lim)}

    def encoder_stack(L):
        wqkv, wo, w1, w2, b1, b2 = [], [], [], [], [], []
        for _ in range(L):
            wqkv.append(jnp.concatenate([xavier(E, E), xavier(E, E), xavier(E, E)],
                                        axis=1).astype(bf16))
            wo.append(lin(E, E)[0])
            w1l, b1l = lin(E, DFF)
            w2l, b2l = lin(DFF, E)
            w1.append(w1l); b1.append(b1l); w2.append(w2l); b2.append(b2l)
        return {"wqkv": jnp.stack(wqkv), "bqkv": jnp.zeros((L, 1, 3 * E), jnp.float32),
                "wo": jnp.stack(wo), "bo": jnp.zeros((L, 1, E), jnp.float32),
                "w1": jnp.stack(w1), "b1": jnp.stack(b1).reshape(L, 1, DFF),
                "w2": jnp.stack(w2), "b2": jnp.stack(b2).reshape(L, 1, E),
                "ln1_g": jnp.ones((L, 1, E), jnp.float32),
                "ln1_b": jnp.zeros((L, 1, E), jnp.float32),
                "ln2_g": jnp.ones((L, 1, E), jnp.float32),
                "ln2_b": jnp.zeros((L, 1, E), jnp.float32)}

    enc_lin_w, enc_lin_b = lin(H, 2048)
    fc_w, fc_b = lin(2048, E)

    # TODO(synk): PositionwiseFeedForward class definition is not provided; using the
    # standard w2(relu(w1(x))) form with d_ff=2048 (dropout is identity in eval).
    ffn_w1, ffn_b1 = lin(E, DFF)
    ffn_w2, ffn_b2 = lin(DFF, E)
    fusion = {
        "self_wqkv": jnp.concatenate([xavier(E, E), xavier(E, E), xavier(E, E)],
                                     axis=1).astype(bf16),
        "self_bqkv": jnp.zeros((3 * E,), jnp.float32),
        "self_wo": lin(E, E)[0], "self_bo": jnp.zeros((E,), jnp.float32),
        "cross_wq": xavier(E, E).astype(bf16), "cross_wk": xavier(E, E).astype(bf16),
        "cross_wv": xavier(E, E).astype(bf16), "cross_wo": lin(E, E)[0],
        "cross_bq": jnp.zeros((E,), jnp.float32), "cross_bk": jnp.zeros((E,), jnp.float32),
        "cross_bv": jnp.zeros((E,), jnp.float32), "cross_bo": jnp.zeros((E,), jnp.float32),
        "ffn_w1": ffn_w1, "ffn_b1": ffn_b1, "ffn_w2": ffn_w2, "ffn_b2": ffn_b2,
        "ln_g": jnp.ones((E,), jnp.float32), "ln_b": jnp.zeros((E,), jnp.float32),
    }

    # Regressor: fc1 columns split into x-part (1024) and pose/shape/cam-part (157->256);
    # the three decoder heads are packed into one (1024, 256) matrix so the iteration
    # state stays a single lane-aligned vector.
    reg_in = 512 * 2 + npose + 13          # 1181 = fc1 fan-in (PyTorch init bound)
    lim1 = 1.0 / np.sqrt(reg_in)
    w_x = uni((E, 1024), lim1).astype(bf16)
    w_psc = jnp.zeros((PS, 1024), jnp.float32).at[:npose + 13].set(
        uni((npose + 13, 1024), lim1)).astype(bf16)
    fc1_b = uni((1024,), lim1)
    fc2_w, fc2_b = lin(1024, 1024)
    lim_dec = 1.0 / np.sqrt(1024)
    w_dec = jnp.concatenate(
        [xavier(1024, npose, 0.01), xavier(1024, 10, 0.01), xavier(1024, 3, 0.01),
         jnp.zeros((1024, PS - (npose + 13)), jnp.float32)], axis=1).astype(bf16)
    b_dec = jnp.concatenate(
        [uni((npose,), lim_dec), uni((10,), lim_dec), uni((3,), lim_dec),
         jnp.zeros((PS - (npose + 13),), jnp.float32)])
    # TODO(synk): SMPL mean-params .npz not available; deterministic synthetic init.
    init_psc = jnp.concatenate(
        [jax.random.normal(kg(), (1, npose), jnp.float32) * 0.1,
         jnp.zeros((1, 10), jnp.float32),
         jnp.array([[0.9, 0.0, 0.0]], jnp.float32),
         jnp.zeros((1, PS - (npose + 13)), jnp.float32)], axis=1)

    return {
        "encoder": {"gru_layers": [gru(2048), gru(1024)],
                    "lin_w": enc_lin_w, "lin_b": enc_lin_b},
        "fc_w": fc_w, "fc_b": fc_b,
        "trans1": encoder_stack(6),
        "trans2": encoder_stack(12),
        "fusion": fusion,
        "regressor": {
            "w_x": w_x, "w_psc": w_psc, "fc1_b": fc1_b,
            "fc2_w": fc2_w, "fc2_b": fc2_b,
            "w_dec": w_dec, "b_dec": b_dec,
            "init_psc": init_psc,
            # TODO(synk): real SMPL joint regressor is a file asset; synthetic stand-in.
            "smpl_joint_w": jax.random.normal(kg(), (24 * 9, 24 * 3), jnp.float32) * 0.05,
        },
    }


# ----------------------------------------------------------------------------
if __name__ == "__main__":
    B, T = 2, 8
    key = jax.random.PRNGKey(0)
    kx, kpc = jax.random.split(key)
    x = jax.random.normal(kx, (B, T, 2048), jnp.float32)            # video features
    pc_feature = jax.random.normal(kpc, (B, T, 1024), jnp.float32)  # point-cloud features

    params = build_params(jax.random.PRNGKey(42))

    forward = jax.jit(vibe_eventpc_forward)
    feature, smpl_output = forward(x, pc_feature, params)
    jax.block_until_ready((feature, smpl_output))

    assert feature.shape == (B * T, 2048)
    assert smpl_output["theta"].shape == (B * T, 85)
    assert smpl_output["kp_2d"].shape == (B * T, 24, 2)
    assert smpl_output["kp_3d"].shape == (B * T, 24, 3)
    assert smpl_output["rotmat"].shape == (B * T, 24, 3, 3)
    assert bool(jnp.all(jnp.isfinite(feature)))
    assert bool(jnp.all(jnp.isfinite(smpl_output["theta"])))
    assert bool(jnp.all(jnp.isfinite(smpl_output["kp_2d"])))

    print("KERNEL_OK")
</pallas_src>

<mosaic_0001>
module attributes {stable_mosaic.version = 11 : i64} {
  func.func @_linear_kernel(%arg0: i32, %arg1: memref<16x2048xf32, #tpu.memory_space<vmem>>, %arg2: memref<2048x512xbf16, #tpu.memory_space<vmem>>, %arg3: memref<1x512xf32, #tpu.memory_space<vmem>>, %arg4: memref<16x512xf32, #tpu.memory_space<vmem>>) attributes {dimension_semantics = [#tpu.dimension_semantics<parallel>], iteration_bounds = array<i64: 6>, scalar_prefetch = 0 : i64, scratch_operands = 0 : i64, tpu.core_type = #tpu.core_type<tc>, window_params = [{pipeline_mode = #tpu.pipeline_mode<synchronous>, transform_indices = @transform_0, window_bounds = array<i64: 16, 2048>}, {transform_indices = @transform_1, window_bounds = array<i64: 2048, 512>}, {transform_indices = @transform_2, window_bounds = array<i64: 1, 512>}, {transform_indices = @transform_3, window_bounds = array<i64: 16, 512>}]} {
    %c0 = arith.constant 0 : index
    %c0_0 = arith.constant 0 : index
    %0 = vector.load %arg1[%c0, %c0_0] : memref<16x2048xf32, #tpu.memory_space<vmem>>, vector<16x2048xf32>
    %1 = arith.truncf %0 : vector<16x2048xf32> to vector<16x2048xbf16>
    %c0_1 = arith.constant 0 : index
    %c0_2 = arith.constant 0 : index
    %2 = vector.load %arg2[%c0_1, %c0_2] : memref<2048x512xbf16, #tpu.memory_space<vmem>>, vector<2048x512xbf16>
    %cst = arith.constant dense<0.000000e+00> : vector<16x512xf32>
    %3 = tpu.matmul %1, %2, %cst {dimension_numbers = #tpu.dot_dimension_numbers<[1], [0], [0], [1], [0, 0, 1, 1], [], []>} : vector<16x2048xbf16>, vector<2048x512xbf16>, vector<16x512xf32> -> vector<16x512xf32>
    %c0_3 = arith.constant 0 : index
    %c0_4 = arith.constant 0 : index
    %4 = vector.load %arg3[%c0_3, %c0_4] : memref<1x512xf32, #tpu.memory_space<vmem>>, vector<1x512xf32>
    %5 = vector.broadcast %4 : vector<1x512xf32> to vector<16x512xf32>
    %6 = arith.addf %3, %5 : vector<16x512xf32>
    %c0_5 = arith.constant 0 : index
    %c0_6 = arith.constant 0 : index
    %7 = vector.load %arg4[%c0_5, %c0_6] : memref<16x512xf32, #tpu.memory_space<vmem>>, vector<16x512xf32>
    tpu.vector_store %arg4[%c0_5, %c0_6], %6 {strides = array<i32>} : memref<16x512xf32, #tpu.memory_space<vmem>>, vector<16x512xf32>,
    return
  }
  func.func @transform_0(%arg0: i32) -> (i32, i32) {
    %c0_i32 = arith.constant 0 : i32
    %c0_i32_0 = arith.constant 0 : i32
    %c0_i32_1 = arith.constant 0 : i32
    return %c0_i32, %c0_i32_0 : i32, i32
  }
  func.func @transform_1(%arg0: i32) -> (i32, i32) {
    %c0_i32 = arith.constant 0 : i32
    %c0_i32_0 = arith.constant 0 : i32
    return %c0_i32, %arg0 : i32, i32
  }
  func.func @transform_2(%arg0: i32) -> (i32, i32) {
    %c0_i32 = arith.constant 0 : i32
    %c0_i32_0 = arith.constant 0 : i32
    return %c0_i32, %arg0 : i32, i32
  }
  func.func @transform_3(%arg0: i32) -> (i32, i32) {
    %c0_i32 = arith.constant 0 : i32
    %c0_i32_0 = arith.constant 0 : i32
    return %c0_i32, %arg0 : i32, i32
  }
}

</mosaic_0001>

<bundles_post_ra>
// kernel: linear.1
= control target key start
LH: loop header
LB: loop body
LE: loop exit
PB: predicated region body
PF: predicated region fallthrough
CT: control target
= control target key end

     0   :  { %8 = vsyncpa [#allocation3], 0  ;;  %s6584_s0 = inlined_call_operand.hbm [shape: f32[16,2048], index: 0, kind: input, shape index: {}]   ;;  %s6585_s1 = inlined_call_operand.hbm [shape: bf16[2048,3072], index: 1, kind: input, shape index: {}]   ;;  %s6586_s2 = inlined_call_operand.hbm [shape: f32[1,3072], index: 2, kind: input, shape index: {}]   ;;  %s6587_s3 = inlined_call_operand.hbm [shape: f32[16,3072], index: 3, kind: output, shape index: {}]  }
   0x1   :  { %9 = vsyncpa [#allocation6], 0 }
   0x2   :  { %11 = vsyncpa [#allocation6 + $0x1], 0 }
   0x3   :  { %12 = vsyncpa [#allocation4], 0 }
   0x4   :  { %14 = vsyncpa [#allocation4 + $0x1], 0  ;;  %s5828_s12 = smov 0   ;;  %s5830_s13 = smov 0  }
   0x5   :  { %s5832_s14 = smov 0   ;;  %s5834_s15 = smov 0  }
   0x6 LB: > { %s5849_s16 = sadd.s32 1, %s5794_s15   ;;  %s48_s17 = sadd.s32 1, %s5790_s14  ;;  %s5794_s15 = sphi %s5834_s15, %s6613_s15   ;;  %s5790_s14 = sphi %s5832_s14, %s6612_s14   ;;  %s5786_s13 = sphi %s5830_s13, %s6611_s13   ;;  %s5782_s12 = sphi %s5828_s12, %s6610_s12  }
   0x7   : > { %s45_s18 = ssub.s32 %s5794_s15, %s5849_s16  ;;  %p55_p0 = scmp.ne.s32.totalorder %s5790_s14, %s5786_s13 }
   0x8   : > { %p46_p1 = scmp.eq.s32.totalorder %s45_s18, 0  ;;  %p56_p2 = scmp.eq.s32.totalorder %s5794_s15, 0 }
   0x9   : > { %p4824_p3 = scmp.lt.s32.totalorder %s5794_s15, 6  ;;  %s150_s20 = sand.u32 1, %s5794_s15  }
   0xa   : > { %s5859_s19 = scalar_select %p46_p1, %s5790_s14, %s48_s17  }
   0xb   : > { %p57_p4 = por %p56_p2, %p55_p0  ;;  %s152_s21 = sand.u32 1, %s5790_s14  }
   0xc   : > { %s4203_s22 = sshll.u32 %s152_s21, 12  ;;  %s4731_s23 = sshll.u32 %s5794_s15, 8 }
   0xd   : > { %s5872_s26 = scalar_lea.hbm %s6585_s1, %s4731_s23  ;;  %s154_s27 = scalar_lea.vmem [#allocation5], %s4203_s22 }
   0xe   : > { %s161_s28 = sshll.u32 %s154_s27, 4  ;;  %p5874_p5 = pnand %p4824_p3, %p57_p4  ;;  %s5878_s28 = int_to_ptr.vmem [resolvable:$true] %s161_s28 }
   0xf   : > { %s5880_s30 = scalar_lea.sflag [#allocation6], %s150_s20  ;;  %s5636_s4 = scalar_lea.hbm %s5872_s26, 65536 }
  0x10   : > { %s6595_s29 = scalar_select %p5874_p5, 1, 0 }
  0x11   : > { %p5637_p6 = scmp.ne.s32.totalorder %s5872_s26, %s5636_s4  ;;  %p6589_p7 = pneg %p5874_p5 }
  0x12   : > { %s5641_s7 = scalar_lea.hbm %s6585_s1, 393216  ;;  %p5642_p10 = scmp.lt.u32.totalorder %s5872_s26, %s6585_s1 }
  0x13   : > { %p5639_p8 = pnand %p6589_p7, %p5637_p6  ;;  %p5643_p11 = scmp.lt.u32.totalorder %s5641_s7, %s5636_s4 }
  0x14   : > { %p5645_p13 = scmp.lt.u32.totalorder %s5636_s4, %s5872_s26 }
  0x15   : > { %p5640_p9 = pneg %p5639_p8  ;;  %p5644_p12 = por %p5643_p11, %p5642_p10 }
  0x17   : > { %p5646_p1 = por %p5645_p13, %p5644_p12 }
  0x19   : > { %p5647_p2 = pnand %p5646_p1, %p5640_p9 }
  0x1b   : > { %5650 = shalt.err (!%p5647_p2)
}
  0x1c   : > { %s5651_s10 = scalar_lea.vmem %s5878_s28, 65536  ;;  %s5796_s11 = smov [#allocation5]  }
  0x1d   : > { %p5652_p3 = scmp.ne.s32.totalorder %s5878_s28, %s5651_s10  ;;  %s5656_s17 = sshll.u32 %s5796_s11, 4  ;;  %s5657_s17 = int_to_ptr.vmem [resolvable:$false] %s5656_s17 }
  0x1e   : > { %s5658_s18 = scalar_lea.vmem %s5657_s17, 131072  ;;  %p5659_p8 = scmp.lt.s32.totalorder %s5878_s28, %s5657_s17 }
  0x1f   : > { %p5654_p4 = pnand %p5652_p3, %p6589_p7  ;;  %p5660_p10 = scmp.lt.s32.totalorder %s5658_s18, %s5651_s10 }
  0x21   : > { %p5655_p6 = pneg %p5654_p4  ;;  %p5661_p11 = por %p5660_p10, %p5659_p8 }
  0x23   : > { %p5662_p12 = pnand %p5661_p11, %p5655_p6 }
  0x25   : > { %5665 = shalt.err (!%p5662_p12)
}
  0x26   : > { %s5797_s20 = smov 1536   ;;  %s5798_s22 = smov 256  }
  0x27   : > { %s5799_s23 = smov 16   ;;  %s5909_s24 = sadd.s32 4294967295, %s5794_s15  }
  0x28   : > { %4815 = dma.hbm_to_vmem [thread:$0]  (!%p5874_p5), %s5872_s26, 65536, %s5878_s28, %s5880_s30, %s5797_s20, %s5798_s22, %s5799_s23  }
  0x29   : > { %s4199_s25 = sadd.s32 4294967294, %s5794_s15   ;;  %p61_p9 = scmp.ne.s32.totalorder %s5786_s13, %s5782_s12 }
  0x2a   : > { %p6588_p13 = scmp.eq.s32.totalorder %s5909_s24, 0  ;;  %p111_p1 = scmp.eq.s32.totalorder %s5909_s24, 5 }
  0x2b   : > { %p117_p2 = scmp.eq.s32.totalorder %s4199_s25, 5  ;;  %p4200_p3 = scmp.ge.s32.totalorder %s5794_s15, 1 }
  0x2c   : > { %p5919_p4 = por %p6588_p13, %p61_p9  ;;  %p5926_p6 = por %p111_p1, %p55_p0 }
  0x2d   : > { %p5930_p8 = por %p117_p2, %p61_p9  ;;  %p124_p10 = scmp.lt.s32.totalorder %s5794_s15, 7 }
  0x2e   : > { %s6596_s27 = scalar_select %p5919_p4, 1, 0 }
  0x2f   : > { %s6597_s26 = scalar_select %p5926_p6, 1, 0 }
  0x30   : > { %s6598_s28 = scalar_select %p5930_p8, 1, 0 }
  0x31   : > { %p5935_p11 = pnand %p4200_p3, %p124_p10  ;;  %s5800_s5 = smov [#allocation2]  }
  0x32   : > { %s136_s6 = sshll.u32 %s5800_s5, 4  ;;  %s4206_s7 = sshll.u32 %s152_s21, 2  ;;  %s5939_s6 = int_to_ptr.vmem [resolvable:$true] %s136_s6 }
  0x33   : > { %s6599_s4 = scalar_select %p5935_p11, 1, 0 }
  0x34   : > { %p4808_p12 = pneg %p5935_p11  ;;  %s4732_s8 = sshll.u32 %s5794_s15, 6 }
  0x35   : > { %s5955_s17 = scalar_lea.hbm %s6586_s2, %s4732_s8  ;;  %s175_s18 = scalar_lea.vmem [#allocation7], %s4206_s7 }
  0x36   : > { %p5948_p0 = pnand %p4808_p12, %p6588_p13  ;;  %s183_s20 = sshll.u32 %s175_s18, 4  ;;  %s5957_s20 = int_to_ptr.vmem [resolvable:$true] %s183_s20 }
  0x37   : > { %s5666_s21 = scalar_lea.hbm %s6584_s0, 4096 }
  0x38   : > { %p5667_p9 = scmp.ne.s32.totalorder %s6584_s0, %s5666_s21  ;;  %p5668_p1 = pneg %p5948_p0 }
  0x39   : > { %p5673_p10 = scmp.lt.u32.totalorder %s5666_s21, %s6584_s0 }
  0x3a   : > { %p5669_p2 = pnand %p5668_p1, %p5667_p9 }
  0x3c   : > { %p5670_p3 = pneg %p5669_p2 }
  0x3e   : > { %p5675_p12 = pnand %p5673_p10, %p5670_p3 }
  0x40   : > { %5678 = shalt.err (!%p5675_p12)
}
  0x41   : > { %s5679_s7 = scalar_lea.vmem %s5939_s6, 4096  ;;  %p5687_p6 = scmp.lt.s32.totalorder %s5939_s6, %s5939_s6 }
  0x42   : > { %p5680_p13 = scmp.ne.s32.totalorder %s5939_s6, %s5679_s7  ;;  %p5688_p4 = scmp.lt.s32.totalorder %s5679_s7, %s5679_s7 }
  0x44   : > { %p5682_p7 = pnand %p5680_p13, %p5668_p1  ;;  %p5689_p11 = por %p5688_p4, %p5687_p6 }
  0x46   : > { %p5683_p8 = pneg %p5682_p7 }
  0x48   : > { %p5690_p5 = pnand %p5689_p11, %p5683_p8 }
  0x4a   : > { %5693 = shalt.err (!%p5690_p5)
}
  0x4b   : > { %s5801_s8 = smov 2048   ;;  %s5802_s18 = smov 128  }
  0x4c   : > { %4811 = dma.hbm_to_vmem [thread:$0]  (!%p5948_p0), %s6584_s0, 4096, %s5939_s6, [#allocation3], %s5801_s8, %s5801_s8, %s5802_s18  }
  0x4d   : > { %s5694_s21 = scalar_lea.hbm %s5955_s17, 64  ;;  %p6601_p13 = scmp.ne.s32.totalorder %s6595_s29, 0 }
  0x4e   : > { %p5695_p7 = scmp.ne.s32.totalorder %s5955_s17, %s5694_s21  ;;  %s5699_s10 = scalar_lea.hbm %s6586_s2, 384 }
  0x4f   : > { %p6602_p4 = pneg %p6601_p13  ;;  %p5700_p8 = scmp.lt.u32.totalorder %s5955_s17, %s6586_s2 }
  0x50   : > { %p5701_p11 = scmp.lt.u32.totalorder %s5699_s10, %s5694_s21  ;;  %p5703_p1 = scmp.lt.u32.totalorder %s5694_s21, %s5955_s17 }
  0x51   : > { %p5697_p6 = pnand %p5695_p7, %p6602_p4 }
  0x52   : > { %p5702_p9 = por %p5701_p11, %p5700_p8 }
  0x53   : > { %p5698_p5 = pneg %p5697_p6 }
  0x54   : > { %p5704_p2 = por %p5703_p1, %p5702_p9 }
  0x56   : > { %p5705_p3 = pnand %p5704_p2, %p5698_p5 }
  0x58   : > { %5708 = shalt.err (!%p5705_p3)
}
  0x59   : > { %s5709_s6 = scalar_lea.vmem %s5957_s20, 64  ;;  %p6603_p10 = pmov %p6602_p4 }
  0x5a   : > { %p5710_p0 = scmp.ne.s32.totalorder %s5957_s20, %s5709_s6  ;;  %s5803_s9 = smov [#allocation7]  }
  0x5b   : > { %s5714_s8 = sshll.u32 %s5803_s9, 4  ;;  %s5715_s8 = int_to_ptr.vmem [resolvable:$false] %s5714_s8 }
  0x5c   : > { %p5712_p12 = pnand %p5710_p0, %p6603_p10  ;;  %s5716_s18 = scalar_lea.vmem %s5715_s8, 128 }
  0x5d   : > { %p5717_p4 = scmp.lt.s32.totalorder %s5957_s20, %s5715_s8  ;;  %p5718_p6 = scmp.lt.s32.totalorder %s5716_s18, %s5709_s6 }
  0x5e   : > { %p5713_p7 = pneg %p5712_p12 }
  0x5f   : > { %p5719_p8 = por %p5718_p6, %p5717_p4 }
  0x61   : > { %p5720_p11 = pnand %p5719_p8, %p5713_p7 }
  0x63   : > { %5723 = shalt.err (!%p5720_p11)
}
  0x64   : > { %4818 = dma.hbm_to_vmem [thread:$0]  (!%p6601_p13), %s5955_s17, 64, %s5957_s20, %s5880_s30  }
  0x65   : > { %p6604_p5 = scmp.ne.s32.totalorder %s6599_s4, 0 }
  0x66   : > { %p6605_p9 = scmp.eq.s32.totalorder (!%p6604_p5), %s5909_s24, 0 }
  0x67   : > { %192 = sbr.rel (%p6604_p5) target bundleno = 862 (0x35e), region = 32 }
  0x6e   : > { %5769 = dma.done.wait (%p6605_p9), [#allocation3], 4096   ;;  %p6606_p1 = pmov %p6605_p9 }
  0x6f   : > { %s198_s22 = sand.u32 1, %s5909_s24   ;;  %s6012_s23 = sand.u32 1, %s5786_s13  }
  0x70   : > { %5771 = vsyncadd (%p6606_p1), [#allocation3], 4294963200  ;;  %s4211_s29 = sshll.u32 %s6012_s23, 12  ;;  %s199_s21 = scalar_lea.sflag [#allocation6], %s198_s22 }
  0x71   : > { %s6015_s25 = scalar_lea.vmem [#allocation5], %s4211_s29  ;;  %p6607_p13 = scmp.ne.s32.totalorder %s6596_s27, 0 }
  0x73   : > { %5773 = dma.done.wait (%p6607_p13), %s199_s21, 65600  }
  0x74   : > { %5775 = vsyncadd (%p6607_p13), %s199_s21, 4294901696  ;;  %v4868_v0 = vld [vmem:[%s6015_s25 + $0x4] ss:$16 sps:$4 sm:$0xff]   ;;  %v4870_v1 = vld [vmem:[%s6015_s25 + $0xc] ss:$16 sps:$4 sm:$0xff]   ;;  %s4212_s30 = sshll.u32 %s6012_s23, 2 }
  0x75   : > { %3384 = vmatprep.subr.bf16.mxu0 %v4868_v0  ;;  %v4872_v2 = vld [vmem:[%s6015_s25] ss:$16 sps:$4 sm:$0xff]   ;;  %v4873_v3 = vld [vmem:[%s6015_s25 + $0x8] ss:$16 sps:$4 sm:$0xff]   ;;  %3728 = vmatprep.subr.bf16.mxu1 %v4870_v1  ;;  %v4874_v4 = vld [vmem:[%s6015_s25 + $0x24] ss:$16 sps:$4 sm:$0xff]  }
  0x76   : > { %3385 = vmatpush1.bf16.msra.mxu0 %v4872_v2  ;;  %3729 = vmatpush1.bf16.msra.mxu1 %v4873_v3  ;;  %v4876_v5 = vld [vmem:[%s6015_s25 + $0x2c] ss:$16 sps:$4 sm:$0xff]   ;;  %v4878_v6 = vld [vmem:[%s6015_s25 + $0x20] ss:$16 sps:$4 sm:$0xff]   ;;  %v4879_v7 = vld [vmem:[%s6015_s25 + $0x28] ss:$16 sps:$4 sm:$0xff]  }
  0x77   : > { %3386 = vmatprep.subr.bf16.mxu0 %v4874_v4  ;;  %3730 = vmatprep.subr.bf16.mxu1 %v4876_v5  ;;  %v4880_v8 = vld [vmem:[%s6015_s25 + $0x44] ss:$16 sps:$4 sm:$0xff]   ;;  %v4882_v9 = vld [vmem:[%s6015_s25 + $0x4c] ss:$16 sps:$4 sm:$0xff]   ;;  %v4884_v10 = vld [vmem:[%s6015_s25 + $0x40] ss:$16 sps:$4 sm:$0xff]  }
  0x78   : > { %v4885_v11 = vld [vmem:[%s6015_s25 + $0x48] ss:$16 sps:$4 sm:$0xff]   ;;  %v4886_v12 = vld [vmem:[%s6015_s25 + $0x64] ss:$16 sps:$4 sm:$0xff]   ;;  %v4888_v13 = vld [vmem:[%s6015_s25 + $0x6c] ss:$16 sps:$4 sm:$0xff]  }
  0x79   : > { %v4890_v14 = vld [vmem:[%s6015_s25 + $0x60] ss:$16 sps:$4 sm:$0xff]   ;;  %v4891_v15 = vld [vmem:[%s6015_s25 + $0x68] ss:$16 sps:$4 sm:$0xff]   ;;  %v4892_v16 = vld [vmem:[%s6015_s25 + $0x84] ss:$16 sps:$4 sm:$0xff]  }
  0x7a   : > { %3387 = vmatpush1.bf16.msra.mxu0 %v4878_v6  ;;  %3731 = vmatpush1.bf16.msra.mxu1 %v4879_v7  ;;  %v4894_v17 = vld [vmem:[%s6015_s25 + $0x8c] ss:$16 sps:$4 sm:$0xff]   ;;  %v4896_v18 = vld [vmem:[%s6015_s25 + $0x80] ss:$16 sps:$4 sm:$0xff]   ;;  %v4897_v19 = vld [vmem:[%s6015_s25 + $0x88] ss:$16 sps:$4 sm:$0xff]  }
  0x7b   : > { %3388 = vmatprep.subr.bf16.mxu0 %v4880_v8  ;;  %3732 = vmatprep.subr.bf16.mxu1 %v4882_v9  ;;  %v4898_v20 = vld [vmem:[%s6015_s25 + $0xa4] ss:$16 sps:$4 sm:$0xff]   ;;  %v4900_v21 = vld [vmem:[%s6015_s25 + $0xac] ss:$16 sps:$4 sm:$0xff]   ;;  %v4902_v22 = vld [vmem:[%s6015_s25 + $0xa0] ss:$16 sps:$4 sm:$0xff]  }
  0x7c   : > { %v4903_v23 = vld [vmem:[%s6015_s25 + $0xa8] ss:$16 sps:$4 sm:$0xff]   ;;  %v4904_v24 = vld [vmem:[%s6015_s25 + $0xc4] ss:$16 sps:$4 sm:$0xff]   ;;  %v4906_v25 = vld [vmem:[%s6015_s25 + $0xcc] ss:$16 sps:$4 sm:$0xff]  }
  0x7d   : > { %v4908_v26 = vld [vmem:[%s6015_s25 + $0xc0] ss:$16 sps:$4 sm:$0xff]   ;;  %v4909_v27 = vld [vmem:[%s6015_s25 + $0xc8] ss:$16 sps:$4 sm:$0xff]   ;;  %v4910_v28 = vld [vmem:[%s6015_s25 + $0xe4] ss:$16 sps:$4 sm:$0xff]  }
  0x7e   : > { %3389 = vmatpush1.bf16.msra.mxu0 %v4884_v10  ;;  %3733 = vmatpush1.bf16.msra.mxu1 %v4885_v11  ;;  %v4912_v29 = vld [vmem:[%s6015_s25 + $0xec] ss:$16 sps:$4 sm:$0xff]   ;;  %v4914_v30 = vld [vmem:[%s6015_s25 + $0xe0] ss:$16 sps:$4 sm:$0xff]   ;;  %v4915_v31 = vld [vmem:[%s6015_s25 + $0xe8] ss:$16 sps:$4 sm:$0xff]  }
  0x7f   : > { %3390 = vmatprep.subr.bf16.mxu0 %v4886_v12  ;;  %3734 = vmatprep.subr.bf16.mxu1 %v4888_v13  ;;  %v4916_v32 = vld [vmem:[%s6015_s25 + $0x104] ss:$16 sps:$4 sm:$0xff]   ;;  %v4918_v33 = vld [vmem:[%s6015_s25 + $0x10c] ss:$16 sps:$4 sm:$0xff]   ;;  %v4920_v34 = vld [vmem:[%s6015_s25 + $0x100] ss:$16 sps:$4 sm:$0xff]  }
  0x80   : > { %v4921_v35 = vld [vmem:[%s6015_s25 + $0x108] ss:$16 sps:$4 sm:$0xff]   ;;  %v4922_v36 = vld [vmem:[%s6015_s25 + $0x124] ss:$16 sps:$4 sm:$0xff]   ;;  %v4924_v37 = vld [vmem:[%s6015_s25 + $0x12c] ss:$16 sps:$4 sm:$0xff]  }
  0x81   : > { %v4926_v38 = vld [vmem:[%s6015_s25 + $0x120] ss:$16 sps:$4 sm:$0xff]   ;;  %v4927_v39 = vld [vmem:[%s6015_s25 + $0x128] ss:$16 sps:$4 sm:$0xff]   ;;  %v4928_v40 = vld [vmem:[%s6015_s25 + $0x144] ss:$16 sps:$4 sm:$0xff]  }
  0x82   : > { %3391 = vmatpush1.bf16.msra.mxu0 %v4890_v14  ;;  %3735 = vmatpush1.bf16.msra.mxu1 %v4891_v15  ;;  %v4930_v41 = vld [vmem:[%s6015_s25 + $0x14c] ss:$16 sps:$4 sm:$0xff]   ;;  %v4932_v42 = vld [vmem:[%s6015_s25 + $0x140] ss:$16 sps:$4 sm:$0xff]   ;;  %v4933_v43 = vld [vmem:[%s6015_s25 + $0x148] ss:$16 sps:$4 sm:$0xff]  }
  0x83   : > { %3392 = vmatprep.subr.bf16.mxu0 %v4892_v16  ;;  %3736 = vmatprep.subr.bf16.mxu1 %v4894_v17  ;;  %v4934_v44 = vld [vmem:[%s6015_s25 + $0x164] ss:$16 sps:$4 sm:$0xff]   ;;  %v4936_v45 = vld [vmem:[%s6015_s25 + $0x16c] ss:$16 sps:$4 sm:$0xff]   ;;  %v4938_v48 = vld [vmem:[%s6015_s25 + $0x160] ss:$16 sps:$4 sm:$0xff]  }
  0x84   : > { %v243_v46 = vld [vmem:[#allocation2 + $0x8] sm:$0xff]  ;;  %v4940_v51 = vld [vmem:[%s6015_s25 + $0x184] ss:$16 sps:$4 sm:$0xff]   ;;  %v4944_v53 = vld [vmem:[%s6015_s25 + $0x180] ss:$16 sps:$4 sm:$0xff]   ;;  %s211_s27 = scalar_lea.vmem [#allocation7], %s4212_s30 }
  0x85   : > { %v259_v47 = vld [vmem:[#allocation2 + $0x88] sm:$0xff]  ;;  %v4946_v55 = vld [vmem:[%s6015_s25 + $0x1a4] ss:$16 sps:$4 sm:$0xff]   ;;  %v4950_v57 = vld [vmem:[%s6015_s25 + $0x1a0] ss:$16 sps:$4 sm:$0xff]   ;;  %s4213_s4 = sshll.u32 %s6012_s23, 6 }
  0x86   : > { %3393 = vmatpush1.bf16.msra.mxu0 %v4896_v18  ;;  %3737 = vmatpush1.bf16.msra.mxu1 %v4897_v19  ;;  %v4939_v49 = vld [vmem:[%s6015_s25 + $0x168] ss:$16 sps:$4 sm:$0xff]   ;;  %v275_v50 = vpack.c.bf16 %v259_v47, %v243_v46  ;;  %v4942_v52 = vld [vmem:[%s6015_s25 + $0x18c] ss:$16 sps:$4 sm:$0xff]   ;;  %v4952_v59 = vld [vmem:[%s6015_s25 + $0x1c4] ss:$16 sps:$4 sm:$0xff]  }
  0x87   : > { %3394 = vmatprep.subr.bf16.mxu0 %v4898_v20  ;;  %3738 = vmatprep.subr.bf16.mxu1 %v4900_v21  ;;  %v4945_v54 = vld [vmem:[%s6015_s25 + $0x188] ss:$16 sps:$4 sm:$0xff]   ;;  %v4948_v56 = vld [vmem:[%s6015_s25 + $0x1ac] ss:$16 sps:$4 sm:$0xff]   ;;  %v4956_v61 = vld [vmem:[%s6015_s25 + $0x1c0] ss:$16 sps:$4 sm:$0xff]  }
  0x88   : > { %3416 = vmatprep.mubr.bf16.mxu0 %v275_v50  ;;  %3760 = vmatprep.mubr.bf16.mxu1 %v275_v50  ;;  %v4951_v58 = vld [vmem:[%s6015_s25 + $0x1a8] ss:$16 sps:$4 sm:$0xff]   ;;  %v4954_v60 = vld [vmem:[%s6015_s25 + $0x1cc] ss:$16 sps:$4 sm:$0xff]   ;;  %v4958_v63 = vld [vmem:[%s6015_s25 + $0x1e4] ss:$16 sps:$4 sm:$0xff]  }
  0x89   : > { %v4957_v62 = vld [vmem:[%s6015_s25 + $0x1c8] ss:$16 sps:$4 sm:$0xff]   ;;  %v4960_v0 = vld [vmem:[%s6015_s25 + $0x1ec] ss:$16 sps:$4 sm:$0xff]   ;;  %v4962_v1 = vld [vmem:[%s6015_s25 + $0x1e0] ss:$16 sps:$4 sm:$0xff]  }
  0x8a   : > { %3395 = vmatpush1.bf16.msra.mxu0 %v4902_v22  ;;  %3739 = vmatpush1.bf16.msra.mxu1 %v4903_v23  ;;  %v4963_v2 = vld [vmem:[%s6015_s25 + $0x1e8] ss:$16 sps:$4 sm:$0xff]   ;;  %v4966_v3 = vld [vmem:[%s6015_s25 + $0x204] ss:$16 sps:$4 sm:$0xff]   ;;  %v4969_v6 = vld [vmem:[%s6015_s25 + $0x20c] ss:$16 sps:$4 sm:$0xff]  }
  0x8b   : > { %3396 = vmatprep.subr.bf16.mxu0 %v4904_v24  ;;  %3740 = vmatprep.subr.bf16.mxu1 %v4906_v25  ;;  %v242_v4 = vld [vmem:[#allocation2] sm:$0xff]  ;;  %v4967_v8 = vld [vmem:[%s6015_s25 + $0x208] ss:$16 sps:$4 sm:$0xff]   ;;  %v4975_v11 = vld [vmem:[%s6015_s25 + $0x22c] ss:$16 sps:$4 sm:$0xff]   ;;  %s238_s17 = scalar_lea.vmem [#allocation8], %s4213_s4 }
  0x8c   : > { %v258_v5 = vld [vmem:[#allocation2 + $0x80] sm:$0xff]  ;;  %v4973_v13 = vld [vmem:[%s6015_s25 + $0x228] ss:$16 sps:$4 sm:$0xff]   ;;  %v4981_v15 = vld [vmem:[%s6015_s25 + $0x24c] ss:$16 sps:$4 sm:$0xff]   ;;  %s4094_s20 = sshll.u32 %s238_s17, 4  ;;  %s6536_s20 = int_to_ptr.vmem [resolvable:$true] %s4094_s20 }
  0x8d   : > { %v4964_v7 = vld [vmem:[%s6015_s25 + $0x200] ss:$16 sps:$4 sm:$0xff]   ;;  %v274_v9 = vpack.c.bf16 %v258_v5, %v242_v4  ;;  %v4972_v10 = vld [vmem:[%s6015_s25 + $0x224] ss:$16 sps:$4 sm:$0xff]   ;;  %v4979_v17 = vld [vmem:[%s6015_s25 + $0x248] ss:$16 sps:$4 sm:$0xff]  }
  0x8e   : > { %3397 = vmatpush1.bf16.msra.mxu0 %v4908_v26  ;;  %3741 = vmatpush1.bf16.msra.mxu1 %v4909_v27  ;;  %v4970_v12 = vld [vmem:[%s6015_s25 + $0x220] ss:$16 sps:$4 sm:$0xff]   ;;  %v4978_v14 = vld [vmem:[%s6015_s25 + $0x244] ss:$16 sps:$4 sm:$0xff]   ;;  %v4987_v19 = vld [vmem:[%s6015_s25 + $0x26c] ss:$16 sps:$4 sm:$0xff]  }
  0x8f   : > { %3398 = vmatprep.subr.bf16.mxu0 %v4910_v28  ;;  %3742 = vmatprep.subr.bf16.mxu1 %v4912_v29  ;;  %v4976_v16 = vld [vmem:[%s6015_s25 + $0x240] ss:$16 sps:$4 sm:$0xff]   ;;  %v4984_v18 = vld [vmem:[%s6015_s25 + $0x264] ss:$16 sps:$4 sm:$0xff]   ;;  %v4985_v21 = vld [vmem:[%s6015_s25 + $0x268] ss:$16 sps:$4 sm:$0xff]  }
  0x90   : > { %v4982_v20 = vld [vmem:[%s6015_s25 + $0x260] ss:$16 sps:$4 sm:$0xff]   ;;  %v4990_v22 = vld [vmem:[%s6015_s25 + $0x284] ss:$16 sps:$4 sm:$0xff]   ;;  %v4993_v23 = vld [vmem:[%s6015_s25 + $0x28c] ss:$16 sps:$4 sm:$0xff]  }
  0x91   : > { %v4988_v24 = vld [vmem:[%s6015_s25 + $0x280] ss:$16 sps:$4 sm:$0xff]   ;;  %v4991_v25 = vld [vmem:[%s6015_s25 + $0x288] ss:$16 sps:$4 sm:$0xff]   ;;  %v4996_v26 = vld [vmem:[%s6015_s25 + $0x2a4] ss:$16 sps:$4 sm:$0xff]  }
  0x92   : > { %3399 = vmatpush1.bf16.msra.mxu0 %v4914_v30  ;;  %3743 = vmatpush1.bf16.msra.mxu1 %v4915_v31  ;;  %v4999_v27 = vld [vmem:[%s6015_s25 + $0x2ac] ss:$16 sps:$4 sm:$0xff]   ;;  %v4994_v28 = vld [vmem:[%s6015_s25 + $0x2a0] ss:$16 sps:$4 sm:$0xff]   ;;  %v4997_v29 = vld [vmem:[%s6015_s25 + $0x2a8] ss:$16 sps:$4 sm:$0xff]  }
  0x93   : > { %3400 = vmatprep.subr.bf16.mxu0 %v4916_v32  ;;  %3744 = vmatprep.subr.bf16.mxu1 %v4918_v33  ;;  %v5002_v30 = vld [vmem:[%s6015_s25 + $0x2c4] ss:$16 sps:$4 sm:$0xff]   ;;  %v5005_v31 = vld [vmem:[%s6015_s25 + $0x2cc] ss:$16 sps:$4 sm:$0xff]   ;;  %v5018_v47 = vld [vmem:[%s6015_s25 + $0x320] ss:$16 sps:$4 sm:$0xff]  }
  0x94   : > { %v245_v32 = vld [vmem:[#allocation2 + $0x18] sm:$0xff]  ;;  %v5056_v5 = vld [vmem:[%s6015_s25 + $0x3e4] ss:$16 sps:$4 sm:$0xff]   ;;  %s4733_s5 = sshll.u32 %s5909_s24, 9  ;;  %s4081_s7 = scalar_lea.sflag [#allocation4], %s6012_s23 }
  0x95   : > { %v261_v33 = vld [vmem:[#allocation2 + $0x98] sm:$0xff]  ;;  %s6541_s11 = scalar_lea.hbm %s6587_s3, %s4733_s5  ;;  %s5724_s6 = scalar_lea.vmem %s6536_s20, 1024 }
  0x96   : > { %3401 = vmatpush1.bf16.msra.mxu0 %v4920_v34  ;;  %3745 = vmatpush1.bf16.msra.mxu1 %v4921_v35  ;;  %v5000_v34 = vld [vmem:[%s6015_s25 + $0x2c0] ss:$16 sps:$4 sm:$0xff]   ;;  %v5003_v35 = vld [vmem:[%s6015_s25 + $0x2c8] ss:$16 sps:$4 sm:$0xff]   ;;  %v5023_v46 = vld [vmem:[%s6015_s25 + $0x32c] ss:$16 sps:$4 sm:$0xff]   ;;  %p5725_p2 = scmp.ne.s32.totalorder %s6536_s20, %s5724_s6 }
  0x97   : > { %3402 = vmatprep.subr.bf16.mxu0 %v4922_v36  ;;  %3746 = vmatprep.subr.bf16.mxu1 %v4924_v37  ;;  %v277_v36 = vpack.c.bf16 %v261_v33, %v245_v32  ;;  %v5008_v37 = vld [vmem:[%s6015_s25 + $0x2e4] ss:$16 sps:$4 sm:$0xff]   ;;  %v5029_v50 = vld [vmem:[%s6015_s25 + $0x34c] ss:$16 sps:$4 sm:$0xff]   ;;  %v5051_v4 = vld [vmem:[%s6015_s25 + $0x3c8] ss:$16 sps:$4 sm:$0xff]  }
  0x98   : > { %v5089_v32 = vld [vmem:[%s6015_s25 + $0x48c] ss:$16 sps:$4 sm:$0xff]   ;;  %v5084_v33 = vld [vmem:[%s6015_s25 + $0x480] ss:$16 sps:$4 sm:$0xff]   ;;  %p6608_p3 = scmp.ne.s32.totalorder %s6597_s26, 0  ;;  %s5804_s9 = smov [#allocation8]  }
  0x99   : > { %s5728_s8 = sshll.u32 %s5804_s9, 4  ;;  %s5729_s8 = int_to_ptr.vmem [resolvable:$false] %s5728_s8 }
  0x9a   : > { %3403 = vmatpush1.bf16.msra.mxu0 %v4926_v38  ;;  %3747 = vmatpush1.bf16.msra.mxu1 %v4927_v39  ;;  %v5011_v38 = vld [vmem:[%s6015_s25 + $0x2ec] ss:$16 sps:$4 sm:$0xff]   ;;  %v5006_v39 = vld [vmem:[%s6015_s25 + $0x2e0] ss:$16 sps:$4 sm:$0xff]   ;;  %p5726_p0 = pnand %p5725_p2, %p6608_p3  ;;  %s5730_s18 = scalar_lea.vmem %s5729_s8, 2048 }
  0x9b   : > { %3404 = vmatprep.subr.bf16.mxu0 %v4928_v40  ;;  %3748 = vmatprep.subr.bf16.mxu1 %v4930_v41  ;;  %v5009_v40 = vld [vmem:[%s6015_s25 + $0x2e8] ss:$16 sps:$4 sm:$0xff]   ;;  %v5014_v41 = vld [vmem:[%s6015_s25 + $0x304] ss:$16 sps:$4 sm:$0xff]   ;;  %p5731_p12 = scmp.lt.s32.totalorder %s6536_s20, %s5729_s8  ;;  %p5732_p7 = scmp.lt.s32.totalorder %s5730_s18, %s5724_s6 }
  0x9c   : > { %p5727_p10 = pneg %p5726_p0 }
  0x9d   : > { %p5733_p4 = por %p5732_p7, %p5731_p12 }
  0x9e   : > { %3405 = vmatpush1.bf16.msra.mxu0 %v4932_v42  ;;  %3749 = vmatpush1.bf16.msra.mxu1 %v4933_v43  ;;  %v5017_v42 = vld [vmem:[%s6015_s25 + $0x30c] ss:$16 sps:$4 sm:$0xff]   ;;  %v5012_v43 = vld [vmem:[%s6015_s25 + $0x300] ss:$16 sps:$4 sm:$0xff]  }
  0x9f   : > { %3406 = vmatprep.subr.bf16.mxu0 %v4934_v44  ;;  %3750 = vmatprep.subr.bf16.mxu1 %v4936_v45  ;;  %v5015_v44 = vld [vmem:[%s6015_s25 + $0x308] ss:$16 sps:$4 sm:$0xff]   ;;  %v5020_v45 = vld [vmem:[%s6015_s25 + $0x324] ss:$16 sps:$4 sm:$0xff]   ;;  %p5734_p6 = pnand %p5733_p4, %p5727_p10 }
  0xa2   : > { %3407 = vmatpush1.bf16.msra.mxu0 %v4938_v48  ;;  %3751 = vmatpush1.bf16.msra.mxu1 %v4939_v49  ;;  %v5021_v48 = vld [vmem:[%s6015_s25 + $0x328] ss:$16 sps:$4 sm:$0xff]   ;;  %v5026_v49 = vld [vmem:[%s6015_s25 + $0x344] ss:$16 sps:$4 sm:$0xff]  }
  0xa3   : > { %3408 = vmatprep.subr.bf16.mxu0 %v4940_v51  ;;  %3752 = vmatprep.subr.bf16.mxu1 %v4942_v52  ;;  %v5024_v51 = vld [vmem:[%s6015_s25 + $0x340] ss:$16 sps:$4 sm:$0xff]   ;;  %v5027_v52 = vld [vmem:[%s6015_s25 + $0x348] ss:$16 sps:$4 sm:$0xff]  }
  0xa6   : > { %3409 = vmatpush1.bf16.msra.mxu0 %v4944_v53  ;;  %3753 = vmatpush1.bf16.msra.mxu1 %v4945_v54  ;;  %v5032_v53 = vld [vmem:[%s6015_s25 + $0x364] ss:$16 sps:$4 sm:$0xff]   ;;  %v5035_v54 = vld [vmem:[%s6015_s25 + $0x36c] ss:$16 sps:$4 sm:$0xff]  }
  0xa7   : > { %3410 = vmatprep.subr.bf16.mxu0 %v4946_v55  ;;  %3754 = vmatprep.subr.bf16.mxu1 %v4948_v56  ;;  %v5030_v55 = vld [vmem:[%s6015_s25 + $0x360] ss:$16 sps:$4 sm:$0xff]   ;;  %v5033_v56 = vld [vmem:[%s6015_s25 + $0x368] ss:$16 sps:$4 sm:$0xff]  }
  0xaa   : > { %3411 = vmatpush1.bf16.msra.mxu0 %v4950_v57  ;;  %3755 = vmatpush1.bf16.msra.mxu1 %v4951_v58  ;;  %v5038_v57 = vld [vmem:[%s6015_s25 + $0x384] ss:$16 sps:$4 sm:$0xff]   ;;  %v5041_v58 = vld [vmem:[%s6015_s25 + $0x38c] ss:$16 sps:$4 sm:$0xff]  }
  0xab   : > { %3412 = vmatprep.subr.bf16.mxu0 %v4952_v59  ;;  %3756 = vmatprep.subr.bf16.mxu1 %v4954_v60  ;;  %v5036_v59 = vld [vmem:[%s6015_s25 + $0x380] ss:$16 sps:$4 sm:$0xff]   ;;  %v5039_v60 = vld [vmem:[%s6015_s25 + $0x388] ss:$16 sps:$4 sm:$0xff]  }
  0xae   : > { %3413 = vmatpush1.bf16.msra.mxu0 %v4956_v61  ;;  %3757 = vmatpush1.bf16.msra.mxu1 %v4957_v62  ;;  %v5044_v61 = vld [vmem:[%s6015_s25 + $0x3a4] ss:$16 sps:$4 sm:$0xff]   ;;  %v5047_v62 = vld [vmem:[%s6015_s25 + $0x3ac] ss:$16 sps:$4 sm:$0xff]  }
  0xaf   : > { %3414 = vmatprep.subr.bf16.mxu0 %v4958_v63  ;;  %3758 = vmatprep.subr.bf16.mxu1 %v4960_v0  ;;  %v5042_v63 = vld [vmem:[%s6015_s25 + $0x3a0] ss:$16 sps:$4 sm:$0xff]   ;;  %v5045_v0 = vld [vmem:[%s6015_s25 + $0x3a8] ss:$16 sps:$4 sm:$0xff]  }
  0xb2   : > { %3415 = vmatpush1.bf16.msra.mxu0 %v4962_v1  ;;  %3759 = vmatpush1.bf16.msra.mxu1 %v4963_v2  ;;  %v5050_v1 = vld [vmem:[%s6015_s25 + $0x3c4] ss:$16 sps:$4 sm:$0xff]   ;;  %v5053_v2 = vld [vmem:[%s6015_s25 + $0x3cc] ss:$16 sps:$4 sm:$0xff]  }
  0xb3   : > { %3427 = vmatprep.subr.bf16.mxu0 %v4966_v3  ;;  %3771 = vmatprep.subr.bf16.mxu1 %v4969_v6  ;;  %v5048_v3 = vld [vmem:[%s6015_s25 + $0x3c0] ss:$16 sps:$4 sm:$0xff]   ;;  %v5059_v6 = vld [vmem:[%s6015_s25 + $0x3ec] ss:$16 sps:$4 sm:$0xff]  }
  0xb5   : > { %3417 = vmatmul.mubr.bf16.vlgmr.msra.gmra.mrb[0].mxu0 %v274_v9  ;;  %3761 = vmatmul.mubr.bf16.vlgmr.msra.gmra.mrb[0].mxu1 %v274_v9  ;;  %v5062_v9 = vld [vmem:[%s6015_s25 + $0x404] ss:$16 sps:$4 sm:$0xff]  }
  0xb6   : > { %3428 = vmatpush1.bf16.msra.mxu0 %v4964_v7  ;;  %3772 = vmatpush1.bf16.msra.mxu1 %v4967_v8  ;;  %v5054_v7 = vld [vmem:[%s6015_s25 + $0x3e0] ss:$16 sps:$4 sm:$0xff]   ;;  %v5057_v8 = vld [vmem:[%s6015_s25 + $0x3e8] ss:$16 sps:$4 sm:$0xff]  }
  0xb7   : > { %3429 = vmatprep.subr.bf16.mxu0 %v4972_v10  ;;  %3773 = vmatprep.subr.bf16.mxu1 %v4975_v11  ;;  %v244_v10 = vld [vmem:[#allocation2 + $0x10] sm:$0xff] }
  0xb8   : > { %3459 = vmatprep.mubr.bf16.mxu0 %v277_v36  ;;  %3803 = vmatprep.mubr.bf16.mxu1 %v277_v36  ;;  %v260_v11 = vld [vmem:[#allocation2 + $0x90] sm:$0xff]  ;;  %v5095_v36 = vld [vmem:[%s6015_s25 + $0x4ac] ss:$16 sps:$4 sm:$0xff]  }
  0xba   : > { %3430 = vmatpush1.bf16.msra.mxu0 %v4970_v12  ;;  %3774 = vmatpush1.bf16.msra.mxu1 %v4973_v13  ;;  %v5065_v12 = vld [vmem:[%s6015_s25 + $0x40c] ss:$16 sps:$4 sm:$0xff]   ;;  %v5060_v13 = vld [vmem:[%s6015_s25 + $0x400] ss:$16 sps:$4 sm:$0xff]  }
  0xbb   : > { %3431 = vmatprep.subr.bf16.mxu0 %v4978_v14  ;;  %3775 = vmatprep.subr.bf16.mxu1 %v4981_v15  ;;  %v5063_v14 = vld [vmem:[%s6015_s25 + $0x408] ss:$16 sps:$4 sm:$0xff]   ;;  %v276_v15 = vpack.c.bf16 %v260_v11, %v244_v10  ;;  %v5152_v11 = vld [vmem:[%s6015_s25 + $0x5e4] ss:$16 sps:$4 sm:$0xff]  }
  0xbc   : > { %v5147_v10 = vld [vmem:[%s6015_s25 + $0x5c8] ss:$16 sps:$4 sm:$0xff]  }
  0xbe   : > { %3432 = vmatpush1.bf16.msra.mxu0 %v4976_v16  ;;  %3776 = vmatpush1.bf16.msra.mxu1 %v4979_v17  ;;  %v5068_v16 = vld [vmem:[%s6015_s25 + $0x424] ss:$16 sps:$4 sm:$0xff]   ;;  %v5071_v17 = vld [vmem:[%s6015_s25 + $0x42c] ss:$16 sps:$4 sm:$0xff]  }
  0xbf   : > { %3433 = vmatprep.subr.bf16.mxu0 %v4984_v18  ;;  %3777 = vmatprep.subr.bf16.mxu1 %v4987_v19  ;;  %v247_v18 = vld [vmem:[#allocation2 + $0x28] sm:$0xff] }
  0xc0   : > { %v263_v19 = vld [vmem:[#allocation2 + $0xa8] sm:$0xff] }
  0xc2   : > { %3434 = vmatpush1.bf16.msra.mxu0 %v4982_v20  ;;  %3778 = vmatpush1.bf16.msra.mxu1 %v4985_v21  ;;  %v5066_v20 = vld [vmem:[%s6015_s25 + $0x420] ss:$16 sps:$4 sm:$0xff]   ;;  %v5069_v21 = vld [vmem:[%s6015_s25 + $0x428] ss:$16 sps:$4 sm:$0xff]  }
  0xc3   : > { %3435 = vmatprep.subr.bf16.mxu0 %v4990_v22  ;;  %3779 = vmatprep.subr.bf16.mxu1 %v4993_v23  ;;  %v279_v22 = vpack.c.bf16 %v263_v19, %v247_v18  ;;  %v5074_v23 = vld [vmem:[%s6015_s25 + $0x444] ss:$16 sps:$4 sm:$0xff]   ;;  %v5161_v18 = vld [vmem:[%s6015_s25 + $0x60c] ss:$16 sps:$4 sm:$0xff]   ;;  %v5156_v19 = vld [vmem:[%s6015_s25 + $0x600] ss:$16 sps:$4 sm:$0xff]  }
  0xc6   : > { %3436 = vmatpush1.bf16.msra.mxu0 %v4988_v24  ;;  %3780 = vmatpush1.bf16.msra.mxu1 %v4991_v25  ;;  %v5077_v24 = vld [vmem:[%s6015_s25 + $0x44c] ss:$16 sps:$4 sm:$0xff]   ;;  %v5072_v25 = vld [vmem:[%s6015_s25 + $0x440] ss:$16 sps:$4 sm:$0xff]  }
  0xc7   : > { %3437 = vmatprep.subr.bf16.mxu0 %v4996_v26  ;;  %3781 = vmatprep.subr.bf16.mxu1 %v4999_v27  ;;  %v5075_v26 = vld [vmem:[%s6015_s25 + $0x448] ss:$16 sps:$4 sm:$0xff]   ;;  %v5080_v27 = vld [vmem:[%s6015_s25 + $0x464] ss:$16 sps:$4 sm:$0xff]  }
  0xca   : > { %3438 = vmatpush1.bf16.msra.mxu0 %v4994_v28  ;;  %3782 = vmatpush1.bf16.msra.mxu1 %v4997_v29  ;;  %v5083_v28 = vld [vmem:[%s6015_s25 + $0x46c] ss:$16 sps:$4 sm:$0xff]   ;;  %v5078_v29 = vld [vmem:[%s6015_s25 + $0x460] ss:$16 sps:$4 sm:$0xff]  }
  0xcb   : > { %3439 = vmatprep.subr.bf16.mxu0 %v5002_v30  ;;  %3783 = vmatprep.subr.bf16.mxu1 %v5005_v31  ;;  %v5081_v30 = vld [vmem:[%s6015_s25 + $0x468] ss:$16 sps:$4 sm:$0xff]   ;;  %v5086_v31 = vld [vmem:[%s6015_s25 + $0x484] ss:$16 sps:$4 sm:$0xff]  }
  0xce   : > { %3440 = vmatpush1.bf16.msra.mxu0 %v5000_v34  ;;  %3784 = vmatpush1.bf16.msra.mxu1 %v5003_v35  ;;  %v5087_v34 = vld [vmem:[%s6015_s25 + $0x488] ss:$16 sps:$4 sm:$0xff]   ;;  %v5092_v35 = vld [vmem:[%s6015_s25 + $0x4a4] ss:$16 sps:$4 sm:$0xff]  }
  0xcf   : > { %3441 = vmatprep.subr.bf16.mxu0 %v5008_v37  ;;  %3785 = vmatprep.subr.bf16.mxu1 %v5011_v38  ;;  %v5090_v37 = vld [vmem:[%s6015_s25 + $0x4a0] ss:$16 sps:$4 sm:$0xff]   ;;  %v5093_v38 = vld [vmem:[%s6015_s25 + $0x4a8] ss:$16 sps:$4 sm:$0xff]  }
  0xd2   : > { %3442 = vmatpush1.bf16.msra.mxu0 %v5006_v39  ;;  %3786 = vmatpush1.bf16.msra.mxu1 %v5009_v40  ;;  %v5098_v39 = vld [vmem:[%s6015_s25 + $0x4c4] ss:$16 sps:$4 sm:$0xff]   ;;  %v5101_v40 = vld [vmem:[%s6015_s25 + $0x4cc] ss:$16 sps:$4 sm:$0xff]  }
  0xd3   : > { %3443 = vmatprep.subr.bf16.mxu0 %v5014_v41  ;;  %3787 = vmatprep.subr.bf16.mxu1 %v5017_v42  ;;  %v5096_v41 = vld [vmem:[%s6015_s25 + $0x4c0] ss:$16 sps:$4 sm:$0xff]   ;;  %v5099_v42 = vld [vmem:[%s6015_s25 + $0x4c8] ss:$16 sps:$4 sm:$0xff]  }
  0xd6   : > { %3444 = vmatpush1.bf16.msra.mxu0 %v5012_v43  ;;  %3788 = vmatpush1.bf16.msra.mxu1 %v5015_v44  ;;  %v5104_v43 = vld [vmem:[%s6015_s25 + $0x4e4] ss:$16 sps:$4 sm:$0xff]   ;;  %v5107_v44 = vld [vmem:[%s6015_s25 + $0x4ec] ss:$16 sps:$4 sm:$0xff]  }
  0xd7   : > { %3445 = vmatprep.subr.bf16.mxu0 %v5020_v45  ;;  %3789 = vmatprep.subr.bf16.mxu1 %v5023_v46  ;;  %v5102_v45 = vld [vmem:[%s6015_s25 + $0x4e0] ss:$16 sps:$4 sm:$0xff]   ;;  %v5105_v46 = vld [vmem:[%s6015_s25 + $0x4e8] ss:$16 sps:$4 sm:$0xff]  }
  0xda   : > { %3446 = vmatpush1.bf16.msra.mxu0 %v5018_v47  ;;  %3790 = vmatpush1.bf16.msra.mxu1 %v5021_v48  ;;  %v5110_v47 = vld [vmem:[%s6015_s25 + $0x504] ss:$16 sps:$4 sm:$0xff]   ;;  %v5113_v48 = vld [vmem:[%s6015_s25 + $0x50c] ss:$16 sps:$4 sm:$0xff]  }
  0xdb   : > { %3447 = vmatprep.subr.bf16.mxu0 %v5026_v49  ;;  %3791 = vmatprep.subr.bf16.mxu1 %v5029_v50  ;;  %v5108_v49 = vld [vmem:[%s6015_s25 + $0x500] ss:$16 sps:$4 sm:$0xff]   ;;  %v5111_v50 = vld [vmem:[%s6015_s25 + $0x508] ss:$16 sps:$4 sm:$0xff]  }
  0xde   : > { %3448 = vmatpush1.bf16.msra.mxu0 %v5024_v51  ;;  %3792 = vmatpush1.bf16.msra.mxu1 %v5027_v52  ;;  %v5116_v51 = vld [vmem:[%s6015_s25 + $0x524] ss:$16 sps:$4 sm:$0xff]   ;;  %v5119_v52 = vld [vmem:[%s6015_s25 + $0x52c] ss:$16 sps:$4 sm:$0xff]  }
  0xdf   : > { %3449 = vmatprep.subr.bf16.mxu0 %v5032_v53  ;;  %3793 = vmatprep.subr.bf16.mxu1 %v5035_v54  ;;  %v5114_v53 = vld [vmem:[%s6015_s25 + $0x520] ss:$16 sps:$4 sm:$0xff]   ;;  %v5117_v54 = vld [vmem:[%s6015_s25 + $0x528] ss:$16 sps:$4 sm:$0xff]  }
  0xe2   : > { %3450 = vmatpush1.bf16.msra.mxu0 %v5030_v55  ;;  %3794 = vmatpush1.bf16.msra.mxu1 %v5033_v56  ;;  %v5122_v55 = vld [vmem:[%s6015_s25 + $0x544] ss:$16 sps:$4 sm:$0xff]   ;;  %v5125_v56 = vld [vmem:[%s6015_s25 + $0x54c] ss:$16 sps:$4 sm:$0xff]  }
  0xe3   : > { %3451 = vmatprep.subr.bf16.mxu0 %v5038_v57  ;;  %3795 = vmatprep.subr.bf16.mxu1 %v5041_v58  ;;  %v5120_v57 = vld [vmem:[%s6015_s25 + $0x540] ss:$16 sps:$4 sm:$0xff]   ;;  %v5123_v58 = vld [vmem:[%s6015_s25 + $0x548] ss:$16 sps:$4 sm:$0xff]  }
  0xe6   : > { %3452 = vmatpush1.bf16.msra.mxu0 %v5036_v59  ;;  %3796 = vmatpush1.bf16.msra.mxu1 %v5039_v60  ;;  %v5128_v59 = vld [vmem:[%s6015_s25 + $0x564] ss:$16 sps:$4 sm:$0xff]   ;;  %v5131_v60 = vld [vmem:[%s6015_s25 + $0x56c] ss:$16 sps:$4 sm:$0xff]  }
  0xe7   : > { %3453 = vmatprep.subr.bf16.mxu0 %v5044_v61  ;;  %3797 = vmatprep.subr.bf16.mxu1 %v5047_v62  ;;  %v5126_v61 = vld [vmem:[%s6015_s25 + $0x560] ss:$16 sps:$4 sm:$0xff]   ;;  %v5129_v62 = vld [vmem:[%s6015_s25 + $0x568] ss:$16 sps:$4 sm:$0xff]  }
  0xea   : > { %3454 = vmatpush1.bf16.msra.mxu0 %v5042_v63  ;;  %3798 = vmatpush1.bf16.msra.mxu1 %v5045_v0  ;;  %v5134_v63 = vld [vmem:[%s6015_s25 + $0x584] ss:$16 sps:$4 sm:$0xff]   ;;  %v5137_v0 = vld [vmem:[%s6015_s25 + $0x58c] ss:$16 sps:$4 sm:$0xff]  }
  0xeb   : > { %3455 = vmatprep.subr.bf16.mxu0 %v5050_v1  ;;  %3799 = vmatprep.subr.bf16.mxu1 %v5053_v2  ;;  %v5132_v1 = vld [vmem:[%s6015_s25 + $0x580] ss:$16 sps:$4 sm:$0xff]   ;;  %v5135_v2 = vld [vmem:[%s6015_s25 + $0x588] ss:$16 sps:$4 sm:$0xff]  }
  0xee   : > { %3456 = vmatpush1.bf16.msra.mxu0 %v5048_v3  ;;  %3800 = vmatpush1.bf16.msra.mxu1 %v5051_v4  ;;  %v5140_v3 = vld [vmem:[%s6015_s25 + $0x5a4] ss:$16 sps:$4 sm:$0xff]   ;;  %v5143_v4 = vld [vmem:[%s6015_s25 + $0x5ac] ss:$16 sps:$4 sm:$0xff]  }
  0xef   : > { %3457 = vmatprep.subr.bf16.mxu0 %v5056_v5  ;;  %3801 = vmatprep.subr.bf16.mxu1 %v5059_v6  ;;  %v5138_v5 = vld [vmem:[%s6015_s25 + $0x5a0] ss:$16 sps:$4 sm:$0xff]   ;;  %v5141_v6 = vld [vmem:[%s6015_s25 + $0x5a8] ss:$16 sps:$4 sm:$0xff]  }
  0xf2   : > { %3458 = vmatpush1.bf16.msra.mxu0 %v5054_v7  ;;  %3802 = vmatpush1.bf16.msra.mxu1 %v5057_v8  ;;  %v5146_v7 = vld [vmem:[%s6015_s25 + $0x5c4] ss:$16 sps:$4 sm:$0xff]   ;;  %v5149_v8 = vld [vmem:[%s6015_s25 + $0x5cc] ss:$16 sps:$4 sm:$0xff]  }
  0xf3   : > { %3470 = vmatprep.subr.bf16.mxu0 %v5062_v9  ;;  %3814 = vmatprep.subr.bf16.mxu1 %v5065_v12  ;;  %v5144_v9 = vld [vmem:[%s6015_s25 + $0x5c0] ss:$16 sps:$4 sm:$0xff]   ;;  %v5155_v12 = vld [vmem:[%s6015_s25 + $0x5ec] ss:$16 sps:$4 sm:$0xff]  }
  0xf5   : > { %3460 = vmatmul.mubr.bf16.vlgmr.msra.gmra.mrb[0].mxu0 %v276_v15  ;;  %3804 = vmatmul.mubr.bf16.vlgmr.msra.gmra.mrb[0].mxu1 %v276_v15  ;;  %v5158_v15 = vld [vmem:[%s6015_s25 + $0x604] ss:$16 sps:$4 sm:$0xff]  }
  0xf6   : > { %3471 = vmatpush1.bf16.msra.mxu0 %v5060_v13  ;;  %3815 = vmatpush1.bf16.msra.mxu1 %v5063_v14  ;;  %v5150_v13 = vld [vmem:[%s6015_s25 + $0x5e0] ss:$16 sps:$4 sm:$0xff]   ;;  %v5153_v14 = vld [vmem:[%s6015_s25 + $0x5e8] ss:$16 sps:$4 sm:$0xff]  }
  0xf7   : > { %3472 = vmatprep.subr.bf16.mxu0 %v5068_v16  ;;  %3816 = vmatprep.subr.bf16.mxu1 %v5071_v17  ;;  %v246_v16 = vld [vmem:[#allocation2 + $0x20] sm:$0xff] }
  0xf8   : > { %3502 = vmatprep.mubr.bf16.mxu0 %v279_v22  ;;  %3846 = vmatprep.mubr.bf16.mxu1 %v279_v22  ;;  %v262_v17 = vld [vmem:[#allocation2 + $0xa0] sm:$0xff]  ;;  %v249_v22 = vld [vmem:[#allocation2 + $0x38] sm:$0xff] }
  0xfa   : > { %3473 = vmatpush1.bf16.msra.mxu0 %v5066_v20  ;;  %3817 = vmatpush1.bf16.msra.mxu1 %v5069_v21  ;;  %v5159_v20 = vld [vmem:[%s6015_s25 + $0x608] ss:$16 sps:$4 sm:$0xff]   ;;  %v278_v21 = vpack.c.bf16 %v262_v17, %v246_v16  ;;  %v5248_v17 = vld [vmem:[%s6015_s25 + $0x7e4] ss:$16 sps:$4 sm:$0xff]  }
  0xfb   : > { %3474 = vmatprep.subr.bf16.mxu0 %v5074_v23  ;;  %3818 = vmatprep.subr.bf16.mxu1 %v5077_v24  ;;  %v265_v23 = vld [vmem:[#allocation2 + $0xb8] sm:$0xff]  ;;  %v5164_v24 = vld [vmem:[%s6015_s25 + $0x624] ss:$16 sps:$4 sm:$0xff]  }
  0xfc   : > { %v5243_v16 = vld [vmem:[%s6015_s25 + $0x7c8] ss:$16 sps:$4 sm:$0xff]  }
  0xfe   : > { %3475 = vmatpush1.bf16.msra.mxu0 %v5072_v25  ;;  %3819 = vmatpush1.bf16.msra.mxu1 %v5075_v26  ;;  %v5167_v25 = vld [vmem:[%s6015_s25 + $0x62c] ss:$16 sps:$4 sm:$0xff]   ;;  %v281_v26 = vpack.c.bf16 %v265_v23, %v249_v22  ;;  %v248_v22 = vld [vmem:[#allocation2 + $0x30] sm:$0xff] }
  0xff   : > { %3476 = vmatprep.subr.bf16.mxu0 %v5080_v27  ;;  %3820 = vmatprep.subr.bf16.mxu1 %v5083_v28  ;;  %v5162_v27 = vld [vmem:[%s6015_s25 + $0x620] ss:$16 sps:$4 sm:$0xff]   ;;  %v5165_v28 = vld [vmem:[%s6015_s25 + $0x628] ss:$16 sps:$4 sm:$0xff]  }
 0x100   : > { %v264_v23 = vld [vmem:[#allocation2 + $0xb0] sm:$0xff] }
 0x102   : > { %3477 = vmatpush1.bf16.msra.mxu0 %v5078_v29  ;;  %3821 = vmatpush1.bf16.msra.mxu1 %v5081_v30  ;;  %v5170_v29 = vld [vmem:[%s6015_s25 + $0x644] ss:$16 sps:$4 sm:$0xff]   ;;  %v5173_v30 = vld [vmem:[%s6015_s25 + $0x64c] ss:$16 sps:$4 sm:$0xff]  }
 0x103   : > { %3478 = vmatprep.subr.bf16.mxu0 %v5086_v31  ;;  %3822 = vmatprep.subr.bf16.mxu1 %v5089_v32  ;;  %v5168_v31 = vld [vmem:[%s6015_s25 + $0x640] ss:$16 sps:$4 sm:$0xff]   ;;  %v5171_v32 = vld [vmem:[%s6015_s25 + $0x648] ss:$16 sps:$4 sm:$0xff]  }
 0x106   : > { %3479 = vmatpush1.bf16.msra.mxu0 %v5084_v33  ;;  %3823 = vmatpush1.bf16.msra.mxu1 %v5087_v34  ;;  %v5176_v33 = vld [vmem:[%s6015_s25 + $0x664] ss:$16 sps:$4 sm:$0xff]   ;;  %v5179_v34 = vld [vmem:[%s6015_s25 + $0x66c] ss:$16 sps:$4 sm:$0xff]  }
 0x107   : > { %3480 = vmatprep.subr.bf16.mxu0 %v5092_v35  ;;  %3824 = vmatprep.subr.bf16.mxu1 %v5095_v36  ;;  %v5174_v35 = vld [vmem:[%s6015_s25 + $0x660] ss:$16 sps:$4 sm:$0xff]   ;;  %v5177_v36 = vld [vmem:[%s6015_s25 + $0x668] ss:$16 sps:$4 sm:$0xff]  }
 0x10a   : > { %3481 = vmatpush1.bf16.msra.mxu0 %v5090_v37  ;;  %3825 = vmatpush1.bf16.msra.mxu1 %v5093_v38  ;;  %v5182_v37 = vld [vmem:[%s6015_s25 + $0x684] ss:$16 sps:$4 sm:$0xff]   ;;  %v5185_v38 = vld [vmem:[%s6015_s25 + $0x68c] ss:$16 sps:$4 sm:$0xff]  }
 0x10b   : > { %3482 = vmatprep.subr.bf16.mxu0 %v5098_v39  ;;  %3826 = vmatprep.subr.bf16.mxu1 %v5101_v40  ;;  %v5180_v39 = vld [vmem:[%s6015_s25 + $0x680] ss:$16 sps:$4 sm:$0xff]   ;;  %v5183_v40 = vld [vmem:[%s6015_s25 + $0x688] ss:$16 sps:$4 sm:$0xff]  }
 0x10e   : > { %3483 = vmatpush1.bf16.msra.mxu0 %v5096_v41  ;;  %3827 = vmatpush1.bf16.msra.mxu1 %v5099_v42  ;;  %v5188_v41 = vld [vmem:[%s6015_s25 + $0x6a4] ss:$16 sps:$4 sm:$0xff]   ;;  %v5191_v42 = vld [vmem:[%s6015_s25 + $0x6ac] ss:$16 sps:$4 sm:$0xff]  }
 0x10f   : > { %3484 = vmatprep.subr.bf16.mxu0 %v5104_v43  ;;  %3828 = vmatprep.subr.bf16.mxu1 %v5107_v44  ;;  %v5186_v43 = vld [vmem:[%s6015_s25 + $0x6a0] ss:$16 sps:$4 sm:$0xff]   ;;  %v5189_v44 = vld [vmem:[%s6015_s25 + $0x6a8] ss:$16 sps:$4 sm:$0xff]  }
 0x112   : > { %3485 = vmatpush1.bf16.msra.mxu0 %v5102_v45  ;;  %3829 = vmatpush1.bf16.msra.mxu1 %v5105_v46  ;;  %v5194_v45 = vld [vmem:[%s6015_s25 + $0x6c4] ss:$16 sps:$4 sm:$0xff]   ;;  %v5197_v46 = vld [vmem:[%s6015_s25 + $0x6cc] ss:$16 sps:$4 sm:$0xff]  }
 0x113   : > { %3486 = vmatprep.subr.bf16.mxu0 %v5110_v47  ;;  %3830 = vmatprep.subr.bf16.mxu1 %v5113_v48  ;;  %v5192_v47 = vld [vmem:[%s6015_s25 + $0x6c0] ss:$16 sps:$4 sm:$0xff]   ;;  %v5195_v48 = vld [vmem:[%s6015_s25 + $0x6c8] ss:$16 sps:$4 sm:$0xff]  }
 0x116   : > { %3487 = vmatpush1.bf16.msra.mxu0 %v5108_v49  ;;  %3831 = vmatpush1.bf16.msra.mxu1 %v5111_v50  ;;  %v5200_v49 = vld [vmem:[%s6015_s25 + $0x6e4] ss:$16 sps:$4 sm:$0xff]   ;;  %v5203_v50 = vld [vmem:[%s6015_s25 + $0x6ec] ss:$16 sps:$4 sm:$0xff]  }
 0x117   : > { %3488 = vmatprep.subr.bf16.mxu0 %v5116_v51  ;;  %3832 = vmatprep.subr.bf16.mxu1 %v5119_v52  ;;  %v5198_v51 = vld [vmem:[%s6015_s25 + $0x6e0] ss:$16 sps:$4 sm:$0xff]   ;;  %v5201_v52 = vld [vmem:[%s6015_s25 + $0x6e8] ss:$16 sps:$4 sm:$0xff]  }
 0x11a   : > { %3489 = vmatpush1.bf16.msra.mxu0 %v5114_v53  ;;  %3833 = vmatpush1.bf16.msra.mxu1 %v5117_v54  ;;  %v5206_v53 = vld [vmem:[%s6015_s25 + $0x704] ss:$16 sps:$4 sm:$0xff]   ;;  %v5209_v54 = vld [vmem:[%s6015_s25 + $0x70c] ss:$16 sps:$4 sm:$0xff]  }
 0x11b   : > { %3490 = vmatprep.subr.bf16.mxu0 %v5122_v55  ;;  %3834 = vmatprep.subr.bf16.mxu1 %v5125_v56  ;;  %v5204_v55 = vld [vmem:[%s6015_s25 + $0x700] ss:$16 sps:$4 sm:$0xff]   ;;  %v5207_v56 = vld [vmem:[%s6015_s25 + $0x708] ss:$16 sps:$4 sm:$0xff]  }
 0x11e   : > { %3491 = vmatpush1.bf16.msra.mxu0 %v5120_v57  ;;  %3835 = vmatpush1.bf16.msra.mxu1 %v5123_v58  ;;  %v5212_v57 = vld [vmem:[%s6015_s25 + $0x724] ss:$16 sps:$4 sm:$0xff]   ;;  %v5215_v58 = vld [vmem:[%s6015_s25 + $0x72c] ss:$16 sps:$4 sm:$0xff]  }
 0x11f   : > { %3492 = vmatprep.subr.bf16.mxu0 %v5128_v59  ;;  %3836 = vmatprep.subr.bf16.mxu1 %v5131_v60  ;;  %v5210_v59 = vld [vmem:[%s6015_s25 + $0x720] ss:$16 sps:$4 sm:$0xff]   ;;  %v5213_v60 = vld [vmem:[%s6015_s25 + $0x728] ss:$16 sps:$4 sm:$0xff]  }
 0x122   : > { %3493 = vmatpush1.bf16.msra.mxu0 %v5126_v61  ;;  %3837 = vmatpush1.bf16.msra.mxu1 %v5129_v62  ;;  %v5218_v61 = vld [vmem:[%s6015_s25 + $0x744] ss:$16 sps:$4 sm:$0xff]   ;;  %v5221_v62 = vld [vmem:[%s6015_s25 + $0x74c] ss:$16 sps:$4 sm:$0xff]  }
 0x123   : > { %3494 = vmatprep.subr.bf16.mxu0 %v5134_v63  ;;  %3838 = vmatprep.subr.bf16.mxu1 %v5137_v0  ;;  %v5216_v63 = vld [vmem:[%s6015_s25 + $0x740] ss:$16 sps:$4 sm:$0xff]   ;;  %v5219_v0 = vld [vmem:[%s6015_s25 + $0x748] ss:$16 sps:$4 sm:$0xff]  }
 0x126   : > { %3495 = vmatpush1.bf16.msra.mxu0 %v5132_v1  ;;  %3839 = vmatpush1.bf16.msra.mxu1 %v5135_v2  ;;  %v5224_v1 = vld [vmem:[%s6015_s25 + $0x764] ss:$16 sps:$4 sm:$0xff]   ;;  %v5227_v2 = vld [vmem:[%s6015_s25 + $0x76c] ss:$16 sps:$4 sm:$0xff]  }
 0x127   : > { %3496 = vmatprep.subr.bf16.mxu0 %v5140_v3  ;;  %3840 = vmatprep.subr.bf16.mxu1 %v5143_v4  ;;  %v5222_v3 = vld [vmem:[%s6015_s25 + $0x760] ss:$16 sps:$4 sm:$0xff]   ;;  %v5225_v4 = vld [vmem:[%s6015_s25 + $0x768] ss:$16 sps:$4 sm:$0xff]  }
 0x12a   : > { %3497 = vmatpush1.bf16.msra.mxu0 %v5138_v5  ;;  %3841 = vmatpush1.bf16.msra.mxu1 %v5141_v6  ;;  %v5230_v5 = vld [vmem:[%s6015_s25 + $0x784] ss:$16 sps:$4 sm:$0xff]   ;;  %v5233_v6 = vld [vmem:[%s6015_s25 + $0x78c] ss:$16 sps:$4 sm:$0xff]  }
 0x12b   : > { %3498 = vmatprep.subr.bf16.mxu0 %v5146_v7  ;;  %3842 = vmatprep.subr.bf16.mxu1 %v5149_v8  ;;  %v5228_v7 = vld [vmem:[%s6015_s25 + $0x780] ss:$16 sps:$4 sm:$0xff]   ;;  %v5231_v8 = vld [vmem:[%s6015_s25 + $0x788] ss:$16 sps:$4 sm:$0xff]  }
 0x12e   : > { %3499 = vmatpush1.bf16.msra.mxu0 %v5144_v9  ;;  %3843 = vmatpush1.bf16.msra.mxu1 %v5147_v10  ;;  %v5236_v9 = vld [vmem:[%s6015_s25 + $0x7a4] ss:$16 sps:$4 sm:$0xff]   ;;  %v5239_v10 = vld [vmem:[%s6015_s25 + $0x7ac] ss:$16 sps:$4 sm:$0xff]  }
 0x12f   : > { %3500 = vmatprep.subr.bf16.mxu0 %v5152_v11  ;;  %3844 = vmatprep.subr.bf16.mxu1 %v5155_v12  ;;  %v5234_v11 = vld [vmem:[%s6015_s25 + $0x7a0] ss:$16 sps:$4 sm:$0xff]   ;;  %v5237_v12 = vld [vmem:[%s6015_s25 + $0x7a8] ss:$16 sps:$4 sm:$0xff]  }
 0x132   : > { %3501 = vmatpush1.bf16.msra.mxu0 %v5150_v13  ;;  %3845 = vmatpush1.bf16.msra.mxu1 %v5153_v14  ;;  %v5242_v13 = vld [vmem:[%s6015_s25 + $0x7c4] ss:$16 sps:$4 sm:$0xff]   ;;  %v5245_v14 = vld [vmem:[%s6015_s25 + $0x7cc] ss:$16 sps:$4 sm:$0xff]  }
 0x133   : > { %3513 = vmatprep.subr.bf16.mxu0 %v5158_v15  ;;  %3857 = vmatprep.subr.bf16.mxu1 %v5161_v18  ;;  %v5240_v15 = vld [vmem:[%s6015_s25 + $0x7c0] ss:$16 sps:$4 sm:$0xff]   ;;  %v5251_v18 = vld [vmem:[%s6015_s25 + $0x7ec] ss:$16 sps:$4 sm:$0xff]  }
 0x135   : > { %3503 = vmatmul.mubr.bf16.vlgmr.msra.gmra.mrb[0].mxu0 %v278_v21  ;;  %3847 = vmatmul.mubr.bf16.vlgmr.msra.gmra.mrb[0].mxu1 %v278_v21  ;;  %v5254_v21 = vld [vmem:[%s6015_s25 + $0x804] ss:$16 sps:$4 sm:$0xff]  }
 0x136   : > { %3514 = vmatpush1.bf16.msra.mxu0 %v5156_v19  ;;  %3858 = vmatpush1.bf16.msra.mxu1 %v5159_v20  ;;  %v5246_v19 = vld [vmem:[%s6015_s25 + $0x7e0] ss:$16 sps:$4 sm:$0xff]   ;;  %v5249_v20 = vld [vmem:[%s6015_s25 + $0x7e8] ss:$16 sps:$4 sm:$0xff]  }
 0x137   : > { %3515 = vmatprep.subr.bf16.mxu0 %v5164_v24  ;;  %3859 = vmatprep.subr.bf16.mxu1 %v5167_v25  ;;  %v5257_v24 = vld [vmem:[%s6015_s25 + $0x80c] ss:$16 sps:$4 sm:$0xff]   ;;  %v5252_v25 = vld [vmem:[%s6015_s25 + $0x800] ss:$16 sps:$4 sm:$0xff]  }
 0x138   : > { %3545 = vmatprep.mubr.bf16.mxu0 %v281_v26  ;;  %3889 = vmatprep.mubr.bf16.mxu1 %v281_v26  ;;  %v5255_v26 = vld [vmem:[%s6015_s25 + $0x808] ss:$16 sps:$4 sm:$0xff]  }
 0x13a   : > { %3516 = vmatpush1.bf16.msra.mxu0 %v5162_v27  ;;  %3860 = vmatpush1.bf16.msra.mxu1 %v5165_v28  ;;  %v280_v27 = vpack.c.bf16 %v264_v23, %v248_v22  ;;  %v251_v28 = vld [vmem:[#allocation2 + $0x48] sm:$0xff]  ;;  %v5344_v23 = vld [vmem:[%s6015_s25 + $0x9e4] ss:$16 sps:$4 sm:$0xff]  }
 0x13b   : > { %3517 = vmatprep.subr.bf16.mxu0 %v5170_v29  ;;  %3861 = vmatprep.subr.bf16.mxu1 %v5173_v30  ;;  %v267_v29 = vld [vmem:[#allocation2 + $0xc8] sm:$0xff]  ;;  %v5260_v30 = vld [vmem:[%s6015_s25 + $0x824] ss:$16 sps:$4 sm:$0xff]  }
 0x13c   : > { %v5339_v22 = vld [vmem:[%s6015_s25 + $0x9c8] ss:$16 sps:$4 sm:$0xff]  }
 0x13e   : > { %3518 = vmatpush1.bf16.msra.mxu0 %v5168_v31  ;;  %3862 = vmatpush1.bf16.msra.mxu1 %v5171_v32  ;;  %v5263_v31 = vld [vmem:[%s6015_s25 + $0x82c] ss:$16 sps:$4 sm:$0xff]   ;;  %v283_v32 = vpack.c.bf16 %v267_v29, %v251_v28  ;;  %v250_v29 = vld [vmem:[#allocation2 + $0x40] sm:$0xff] }
 0x13f   : > { %3519 = vmatprep.subr.bf16.mxu0 %v5176_v33  ;;  %3863 = vmatprep.subr.bf16.mxu1 %v5179_v34  ;;  %v5258_v33 = vld [vmem:[%s6015_s25 + $0x820] ss:$16 sps:$4 sm:$0xff]   ;;  %v5261_v34 = vld [vmem:[%s6015_s25 + $0x828] ss:$16 sps:$4 sm:$0xff]   ;;  %v5353_v28 = vld [vmem:[%s6015_s25 + $0xa0c] ss:$16 sps:$4 sm:$0xff]  }
 0x142   : > { %3520 = vmatpush1.bf16.msra.mxu0 %v5174_v35  ;;  %3864 = vmatpush1.bf16.msra.mxu1 %v5177_v36  ;;  %v5266_v35 = vld [vmem:[%s6015_s25 + $0x844] ss:$16 sps:$4 sm:$0xff]   ;;  %v5269_v36 = vld [vmem:[%s6015_s25 + $0x84c] ss:$16 sps:$4 sm:$0xff]  }
 0x143   : > { %3521 = vmatprep.subr.bf16.mxu0 %v5182_v37  ;;  %3865 = vmatprep.subr.bf16.mxu1 %v5185_v38  ;;  %v5264_v37 = vld [vmem:[%s6015_s25 + $0x840] ss:$16 sps:$4 sm:$0xff]   ;;  %v5267_v38 = vld [vmem:[%s6015_s25 + $0x848] ss:$16 sps:$4 sm:$0xff]  }
 0x146   : > { %3522 = vmatpush1.bf16.msra.mxu0 %v5180_v39  ;;  %3866 = vmatpush1.bf16.msra.mxu1 %v5183_v40  ;;  %v5272_v39 = vld [vmem:[%s6015_s25 + $0x864] ss:$16 sps:$4 sm:$0xff]   ;;  %v5275_v40 = vld [vmem:[%s6015_s25 + $0x86c] ss:$16 sps:$4 sm:$0xff]  }
 0x147   : > { %3523 = vmatprep.subr.bf16.mxu0 %v5188_v41  ;;  %3867 = vmatprep.subr.bf16.mxu1 %v5191_v42  ;;  %v5270_v41 = vld [vmem:[%s6015_s25 + $0x860] ss:$16 sps:$4 sm:$0xff]   ;;  %v5273_v42 = vld [vmem:[%s6015_s25 + $0x868] ss:$16 sps:$4 sm:$0xff]  }
 0x14a   : > { %3524 = vmatpush1.bf16.msra.mxu0 %v5186_v43  ;;  %3868 = vmatpush1.bf16.msra.mxu1 %v5189_v44  ;;  %v5278_v43 = vld [vmem:[%s6015_s25 + $0x884] ss:$16 sps:$4 sm:$0xff]   ;;  %v5281_v44 = vld [vmem:[%s6015_s25 + $0x88c] ss:$16 sps:$4 sm:$0xff]  }
 0x14b   : > { %3525 = vmatprep.subr.bf16.mxu0 %v5194_v45  ;;  %3869 = vmatprep.subr.bf16.mxu1 %v5197_v46  ;;  %v5276_v45 = vld [vmem:[%s6015_s25 + $0x880] ss:$16 sps:$4 sm:$0xff]   ;;  %v5279_v46 = vld [vmem:[%s6015_s25 + $0x888] ss:$16 sps:$4 sm:$0xff]  }
 0x14e   : > { %3526 = vmatpush1.bf16.msra.mxu0 %v5192_v47  ;;  %3870 = vmatpush1.bf16.msra.mxu1 %v5195_v48  ;;  %v5284_v47 = vld [vmem:[%s6015_s25 + $0x8a4] ss:$16 sps:$4 sm:$0xff]   ;;  %v5287_v48 = vld [vmem:[%s6015_s25 + $0x8ac] ss:$16 sps:$4 sm:$0xff]  }
 0x14f   : > { %3527 = vmatprep.subr.bf16.mxu0 %v5200_v49  ;;  %3871 = vmatprep.subr.bf16.mxu1 %v5203_v50  ;;  %v5282_v49 = vld [vmem:[%s6015_s25 + $0x8a0] ss:$16 sps:$4 sm:$0xff]   ;;  %v5285_v50 = vld [vmem:[%s6015_s25 + $0x8a8] ss:$16 sps:$4 sm:$0xff]  }
 0x152   : > { %3528 = vmatpush1.bf16.msra.mxu0 %v5198_v51  ;;  %3872 = vmatpush1.bf16.msra.mxu1 %v5201_v52  ;;  %v5290_v51 = vld [vmem:[%s6015_s25 + $0x8c4] ss:$16 sps:$4 sm:$0xff]   ;;  %v5293_v52 = vld [vmem:[%s6015_s25 + $0x8cc] ss:$16 sps:$4 sm:$0xff]  }
 0x153   : > { %3529 = vmatprep.subr.bf16.mxu0 %v5206_v53  ;;  %3873 = vmatprep.subr.bf16.mxu1 %v5209_v54  ;;  %v5288_v53 = vld [vmem:[%s6015_s25 + $0x8c0] ss:$16 sps:$4 sm:$0xff]   ;;  %v5291_v54 = vld [vmem:[%s6015_s25 + $0x8c8] ss:$16 sps:$4 sm:$0xff]  }
 0x156   : > { %3530 = vmatpush1.bf16.msra.mxu0 %v5204_v55  ;;  %3874 = vmatpush1.bf16.msra.mxu1 %v5207_v56  ;;  %v5296_v55 = vld [vmem:[%s6015_s25 + $0x8e4] ss:$16 sps:$4 sm:$0xff]   ;;  %v5299_v56 = vld [vmem:[%s6015_s25 + $0x8ec] ss:$16 sps:$4 sm:$0xff]  }
 0x157   : > { %3531 = vmatprep.subr.bf16.mxu0 %v5212_v57  ;;  %3875 = vmatprep.subr.bf16.mxu1 %v5215_v58  ;;  %v5294_v57 = vld [vmem:[%s6015_s25 + $0x8e0] ss:$16 sps:$4 sm:$0xff]   ;;  %v5297_v58 = vld [vmem:[%s6015_s25 + $0x8e8] ss:$16 sps:$4 sm:$0xff]  }
 0x15a   : > { %3532 = vmatpush1.bf16.msra.mxu0 %v5210_v59  ;;  %3876 = vmatpush1.bf16.msra.mxu1 %v5213_v60  ;;  %v5302_v59 = vld [vmem:[%s6015_s25 + $0x904] ss:$16 sps:$4 sm:$0xff]   ;;  %v5305_v60 = vld [vmem:[%s6015_s25 + $0x90c] ss:$16 sps:$4 sm:$0xff]  }
 0x15b   : > { %3533 = vmatprep.subr.bf16.mxu0 %v5218_v61  ;;  %3877 = vmatprep.subr.bf16.mxu1 %v5221_v62  ;;  %v5300_v61 = vld [vmem:[%s6015_s25 + $0x900] ss:$16 sps:$4 sm:$0xff]   ;;  %v5303_v62 = vld [vmem:[%s6015_s25 + $0x908] ss:$16 sps:$4 sm:$0xff]  }
 0x15e   : > { %3534 = vmatpush1.bf16.msra.mxu0 %v5216_v63  ;;  %3878 = vmatpush1.bf16.msra.mxu1 %v5219_v0  ;;  %v5308_v63 = vld [vmem:[%s6015_s25 + $0x924] ss:$16 sps:$4 sm:$0xff]   ;;  %v5311_v0 = vld [vmem:[%s6015_s25 + $0x92c] ss:$16 sps:$4 sm:$0xff]  }
 0x15f   : > { %3535 = vmatprep.subr.bf16.mxu0 %v5224_v1  ;;  %3879 = vmatprep.subr.bf16.mxu1 %v5227_v2  ;;  %v5306_v1 = vld [vmem:[%s6015_s25 + $0x920] ss:$16 sps:$4 sm:$0xff]   ;;  %v5309_v2 = vld [vmem:[%s6015_s25 + $0x928] ss:$16 sps:$4 sm:$0xff]  }
 0x162   : > { %3536 = vmatpush1.bf16.msra.mxu0 %v5222_v3  ;;  %3880 = vmatpush1.bf16.msra.mxu1 %v5225_v4  ;;  %v5314_v3 = vld [vmem:[%s6015_s25 + $0x944] ss:$16 sps:$4 sm:$0xff]   ;;  %v5317_v4 = vld [vmem:[%s6015_s25 + $0x94c] ss:$16 sps:$4 sm:$0xff]  }
 0x163   : > { %3537 = vmatprep.subr.bf16.mxu0 %v5230_v5  ;;  %3881 = vmatprep.subr.bf16.mxu1 %v5233_v6  ;;  %v5312_v5 = vld [vmem:[%s6015_s25 + $0x940] ss:$16 sps:$4 sm:$0xff]   ;;  %v5315_v6 = vld [vmem:[%s6015_s25 + $0x948] ss:$16 sps:$4 sm:$0xff]  }
 0x166   : > { %3538 = vmatpush1.bf16.msra.mxu0 %v5228_v7  ;;  %3882 = vmatpush1.bf16.msra.mxu1 %v5231_v8  ;;  %v5320_v7 = vld [vmem:[%s6015_s25 + $0x964] ss:$16 sps:$4 sm:$0xff]   ;;  %v5323_v8 = vld [vmem:[%s6015_s25 + $0x96c] ss:$16 sps:$4 sm:$0xff]  }
 0x167   : > { %3539 = vmatprep.subr.bf16.mxu0 %v5236_v9  ;;  %3883 = vmatprep.subr.bf16.mxu1 %v5239_v10  ;;  %v5318_v9 = vld [vmem:[%s6015_s25 + $0x960] ss:$16 sps:$4 sm:$0xff]   ;;  %v5321_v10 = vld [vmem:[%s6015_s25 + $0x968] ss:$16 sps:$4 sm:$0xff]  }
 0x16a   : > { %3540 = vmatpush1.bf16.msra.mxu0 %v5234_v11  ;;  %3884 = vmatpush1.bf16.msra.mxu1 %v5237_v12  ;;  %v5326_v11 = vld [vmem:[%s6015_s25 + $0x984] ss:$16 sps:$4 sm:$0xff]   ;;  %v5329_v12 = vld [vmem:[%s6015_s25 + $0x98c] ss:$16 sps:$4 sm:$0xff]  }
 0x16b   : > { %3541 = vmatprep.subr.bf16.mxu0 %v5242_v13  ;;  %3885 = vmatprep.subr.bf16.mxu1 %v5245_v14  ;;  %v5324_v13 = vld [vmem:[%s6015_s25 + $0x980] ss:$16 sps:$4 sm:$0xff]   ;;  %v5327_v14 = vld [vmem:[%s6015_s25 + $0x988] ss:$16 sps:$4 sm:$0xff]  }
 0x16e   : > { %3542 = vmatpush1.bf16.msra.mxu0 %v5240_v15  ;;  %3886 = vmatpush1.bf16.msra.mxu1 %v5243_v16  ;;  %v5332_v15 = vld [vmem:[%s6015_s25 + $0x9a4] ss:$16 sps:$4 sm:$0xff]   ;;  %v5335_v16 = vld [vmem:[%s6015_s25 + $0x9ac] ss:$16 sps:$4 sm:$0xff]  }
 0x16f   : > { %3543 = vmatprep.subr.bf16.mxu0 %v5248_v17  ;;  %3887 = vmatprep.subr.bf16.mxu1 %v5251_v18  ;;  %v5330_v17 = vld [vmem:[%s6015_s25 + $0x9a0] ss:$16 sps:$4 sm:$0xff]   ;;  %v5333_v18 = vld [vmem:[%s6015_s25 + $0x9a8] ss:$16 sps:$4 sm:$0xff]  }
 0x172   : > { %3544 = vmatpush1.bf16.msra.mxu0 %v5246_v19  ;;  %3888 = vmatpush1.bf16.msra.mxu1 %v5249_v20  ;;  %v5338_v19 = vld [vmem:[%s6015_s25 + $0x9c4] ss:$16 sps:$4 sm:$0xff]   ;;  %v5341_v20 = vld [vmem:[%s6015_s25 + $0x9cc] ss:$16 sps:$4 sm:$0xff]  }
 0x173   : > { %3556 = vmatprep.subr.bf16.mxu0 %v5254_v21  ;;  %3900 = vmatprep.subr.bf16.mxu1 %v5257_v24  ;;  %v5336_v21 = vld [vmem:[%s6015_s25 + $0x9c0] ss:$16 sps:$4 sm:$0xff]   ;;  %v5347_v24 = vld [vmem:[%s6015_s25 + $0x9ec] ss:$16 sps:$4 sm:$0xff]  }
 0x175   : > { %3546 = vmatmul.mubr.bf16.vlgmr.msra.gmra.mrb[0].mxu0 %v280_v27  ;;  %3890 = vmatmul.mubr.bf16.vlgmr.msra.gmra.mrb[0].mxu1 %v280_v27  ;;  %v5350_v27 = vld [vmem:[%s6015_s25 + $0xa04] ss:$16 sps:$4 sm:$0xff]  }
 0x176   : > { %3557 = vmatpush1.bf16.msra.mxu0 %v5252_v25  ;;  %3901 = vmatpush1.bf16.msra.mxu1 %v5255_v26  ;;  %v5342_v25 = vld [vmem:[%s6015_s25 + $0x9e0] ss:$16 sps:$4 sm:$0xff]   ;;  %v5345_v26 = vld [vmem:[%s6015_s25 + $0x9e8] ss:$16 sps:$4 sm:$0xff]  }
 0x177   : > { %3558 = vmatprep.subr.bf16.mxu0 %v5260_v30  ;;  %3902 = vmatprep.subr.bf16.mxu1 %v5263_v31  ;;  %v266_v30 = vld [vmem:[#allocation2 + $0xc0] sm:$0xff]  ;;  %v253_v31 = vld [vmem:[#allocation2 + $0x58] sm:$0xff] }
 0x178   : > { %3588 = vmatprep.mubr.bf16.mxu0 %v283_v32  ;;  %3932 = vmatprep.mubr.bf16.mxu1 %v283_v32  ;;  %v269_v32 = vld [vmem:[#allocation2 + $0xd8] sm:$0xff] }
 0x17a   : > { %3559 = vmatpush1.bf16.msra.mxu0 %v5258_v33  ;;  %3903 = vmatpush1.bf16.msra.mxu1 %v5261_v34  ;;  %v282_v33 = vpack.c.bf16 %v266_v30, %v250_v29  ;;  %v5348_v34 = vld [vmem:[%s6015_s25 + $0xa00] ss:$16 sps:$4 sm:$0xff]   ;;  %v5440_v29 = vld [vmem:[%s6015_s25 + $0xbe4] ss:$16 sps:$4 sm:$0xff]   ;;  %v5443_v30 = vld [vmem:[%s6015_s25 + $0xbec] ss:$16 sps:$4 sm:$0xff]  }
 0x17b   : > { %3560 = vmatprep.subr.bf16.mxu0 %v5266_v35  ;;  %3904 = vmatprep.subr.bf16.mxu1 %v5269_v36  ;;  %v5351_v35 = vld [vmem:[%s6015_s25 + $0xa08] ss:$16 sps:$4 sm:$0xff]   ;;  %v5356_v36 = vld [vmem:[%s6015_s25 + $0xa24] ss:$16 sps:$4 sm:$0xff]  }
 0x17e   : > { %3561 = vmatpush1.bf16.msra.mxu0 %v5264_v37  ;;  %3905 = vmatpush1.bf16.msra.mxu1 %v5267_v38  ;;  %v5359_v37 = vld [vmem:[%s6015_s25 + $0xa2c] ss:$16 sps:$4 sm:$0xff]   ;;  %v285_v38 = vpack.c.bf16 %v269_v32, %v253_v31  ;;  %v5438_v31 = vld [vmem:[%s6015_s25 + $0xbe0] ss:$16 sps:$4 sm:$0xff]   ;;  %v5441_v32 = vld [vmem:[%s6015_s25 + $0xbe8] ss:$16 sps:$4 sm:$0xff]  }
 0x17f   : > { %3562 = vmatprep.subr.bf16.mxu0 %v5272_v39  ;;  %3906 = vmatprep.subr.bf16.mxu1 %v5275_v40  ;;  %v5354_v39 = vld [vmem:[%s6015_s25 + $0xa20] ss:$16 sps:$4 sm:$0xff]   ;;  %v5357_v40 = vld [vmem:[%s6015_s25 + $0xa28] ss:$16 sps:$4 sm:$0xff]  }
 0x182   : > { %3563 = vmatpush1.bf16.msra.mxu0 %v5270_v41  ;;  %3907 = vmatpush1.bf16.msra.mxu1 %v5273_v42  ;;  %v5362_v41 = vld [vmem:[%s6015_s25 + $0xa44] ss:$16 sps:$4 sm:$0xff]   ;;  %v5365_v42 = vld [vmem:[%s6015_s25 + $0xa4c] ss:$16 sps:$4 sm:$0xff]  }
 0x183   : > { %3564 = vmatprep.subr.bf16.mxu0 %v5278_v43  ;;  %3908 = vmatprep.subr.bf16.mxu1 %v5281_v44  ;;  %v5360_v43 = vld [vmem:[%s6015_s25 + $0xa40] ss:$16 sps:$4 sm:$0xff]   ;;  %v5363_v44 = vld [vmem:[%s6015_s25 + $0xa48] ss:$16 sps:$4 sm:$0xff]  }
 0x186   : > { %3565 = vmatpush1.bf16.msra.mxu0 %v5276_v45  ;;  %3909 = vmatpush1.bf16.msra.mxu1 %v5279_v46  ;;  %v5368_v45 = vld [vmem:[%s6015_s25 + $0xa64] ss:$16 sps:$4 sm:$0xff]   ;;  %v5371_v46 = vld [vmem:[%s6015_s25 + $0xa6c] ss:$16 sps:$4 sm:$0xff]  }
 0x187   : > { %3566 = vmatprep.subr.bf16.mxu0 %v5284_v47  ;;  %3910 = vmatprep.subr.bf16.mxu1 %v5287_v48  ;;  %v5366_v47 = vld [vmem:[%s6015_s25 + $0xa60] ss:$16 sps:$4 sm:$0xff]   ;;  %v5369_v48 = vld [vmem:[%s6015_s25 + $0xa68] ss:$16 sps:$4 sm:$0xff]  }
 0x18a   : > { %3567 = vmatpush1.bf16.msra.mxu0 %v5282_v49  ;;  %3911 = vmatpush1.bf16.msra.mxu1 %v5285_v50  ;;  %v5374_v49 = vld [vmem:[%s6015_s25 + $0xa84] ss:$16 sps:$4 sm:$0xff]   ;;  %v5377_v50 = vld [vmem:[%s6015_s25 + $0xa8c] ss:$16 sps:$4 sm:$0xff]  }
 0x18b   : > { %3568 = vmatprep.subr.bf16.mxu0 %v5290_v51  ;;  %3912 = vmatprep.subr.bf16.mxu1 %v5293_v52  ;;  %v5372_v51 = vld [vmem:[%s6015_s25 + $0xa80] ss:$16 sps:$4 sm:$0xff]   ;;  %v5375_v52 = vld [vmem:[%s6015_s25 + $0xa88] ss:$16 sps:$4 sm:$0xff]  }
 0x18e   : > { %3569 = vmatpush1.bf16.msra.mxu0 %v5288_v53  ;;  %3913 = vmatpush1.bf16.msra.mxu1 %v5291_v54  ;;  %v5380_v53 = vld [vmem:[%s6015_s25 + $0xaa4] ss:$16 sps:$4 sm:$0xff]   ;;  %v5383_v54 = vld [vmem:[%s6015_s25 + $0xaac] ss:$16 sps:$4 sm:$0xff]  }
 0x18f   : > { %3570 = vmatprep.subr.bf16.mxu0 %v5296_v55  ;;  %3914 = vmatprep.subr.bf16.mxu1 %v5299_v56  ;;  %v5378_v55 = vld [vmem:[%s6015_s25 + $0xaa0] ss:$16 sps:$4 sm:$0xff]   ;;  %v5381_v56 = vld [vmem:[%s6015_s25 + $0xaa8] ss:$16 sps:$4 sm:$0xff]  }
 0x192   : > { %3571 = vmatpush1.bf16.msra.mxu0 %v5294_v57  ;;  %3915 = vmatpush1.bf16.msra.mxu1 %v5297_v58  ;;  %v5386_v57 = vld [vmem:[%s6015_s25 + $0xac4] ss:$16 sps:$4 sm:$0xff]   ;;  %v5389_v58 = vld [vmem:[%s6015_s25 + $0xacc] ss:$16 sps:$4 sm:$0xff]  }
 0x193   : > { %3572 = vmatprep.subr.bf16.mxu0 %v5302_v59  ;;  %3916 = vmatprep.subr.bf16.mxu1 %v5305_v60  ;;  %v5384_v59 = vld [vmem:[%s6015_s25 + $0xac0] ss:$16 sps:$4 sm:$0xff]   ;;  %v5387_v60 = vld [vmem:[%s6015_s25 + $0xac8] ss:$16 sps:$4 sm:$0xff]  }
 0x196   : > { %3573 = vmatpush1.bf16.msra.mxu0 %v5300_v61  ;;  %3917 = vmatpush1.bf16.msra.mxu1 %v5303_v62  ;;  %v5392_v61 = vld [vmem:[%s6015_s25 + $0xae4] ss:$16 sps:$4 sm:$0xff]   ;;  %v5395_v62 = vld [vmem:[%s6015_s25 + $0xaec] ss:$16 sps:$4 sm:$0xff]  }
 0x197   : > { %3574 = vmatprep.subr.bf16.mxu0 %v5308_v63  ;;  %3918 = vmatprep.subr.bf16.mxu1 %v5311_v0  ;;  %v5390_v63 = vld [vmem:[%s6015_s25 + $0xae0] ss:$16 sps:$4 sm:$0xff]   ;;  %v5393_v0 = vld [vmem:[%s6015_s25 + $0xae8] ss:$16 sps:$4 sm:$0xff]  }
 0x19a   : > { %3575 = vmatpush1.bf16.msra.mxu0 %v5306_v1  ;;  %3919 = vmatpush1.bf16.msra.mxu1 %v5309_v2  ;;  %v5398_v1 = vld [vmem:[%s6015_s25 + $0xb04] ss:$16 sps:$4 sm:$0xff]   ;;  %v5401_v2 = vld [vmem:[%s6015_s25 + $0xb0c] ss:$16 sps:$4 sm:$0xff]  }
 0x19b   : > { %3576 = vmatprep.subr.bf16.mxu0 %v5314_v3  ;;  %3920 = vmatprep.subr.bf16.mxu1 %v5317_v4  ;;  %v5396_v3 = vld [vmem:[%s6015_s25 + $0xb00] ss:$16 sps:$4 sm:$0xff]   ;;  %v5399_v4 = vld [vmem:[%s6015_s25 + $0xb08] ss:$16 sps:$4 sm:$0xff]  }
 0x19e   : > { %3577 = vmatpush1.bf16.msra.mxu0 %v5312_v5  ;;  %3921 = vmatpush1.bf16.msra.mxu1 %v5315_v6  ;;  %v5404_v5 = vld [vmem:[%s6015_s25 + $0xb24] ss:$16 sps:$4 sm:$0xff]   ;;  %v5407_v6 = vld [vmem:[%s6015_s25 + $0xb2c] ss:$16 sps:$4 sm:$0xff]  }
 0x19f   : > { %3578 = vmatprep.subr.bf16.mxu0 %v5320_v7  ;;  %3922 = vmatprep.subr.bf16.mxu1 %v5323_v8  ;;  %v5402_v7 = vld [vmem:[%s6015_s25 + $0xb20] ss:$16 sps:$4 sm:$0xff]   ;;  %v5405_v8 = vld [vmem:[%s6015_s25 + $0xb28] ss:$16 sps:$4 sm:$0xff]  }
 0x1a2   : > { %3579 = vmatpush1.bf16.msra.mxu0 %v5318_v9  ;;  %3923 = vmatpush1.bf16.msra.mxu1 %v5321_v10  ;;  %v5410_v9 = vld [vmem:[%s6015_s25 + $0xb44] ss:$16 sps:$4 sm:$0xff]   ;;  %v5413_v10 = vld [vmem:[%s6015_s25 + $0xb4c] ss:$16 sps:$4 sm:$0xff]  }
 0x1a3   : > { %3580 = vmatprep.subr.bf16.mxu0 %v5326_v11  ;;  %3924 = vmatprep.subr.bf16.mxu1 %v5329_v12  ;;  %v5408_v11 = vld [vmem:[%s6015_s25 + $0xb40] ss:$16 sps:$4 sm:$0xff]   ;;  %v5411_v12 = vld [vmem:[%s6015_s25 + $0xb48] ss:$16 sps:$4 sm:$0xff]  }
 0x1a6   : > { %3581 = vmatpush1.bf16.msra.mxu0 %v5324_v13  ;;  %3925 = vmatpush1.bf16.msra.mxu1 %v5327_v14  ;;  %v5416_v13 = vld [vmem:[%s6015_s25 + $0xb64] ss:$16 sps:$4 sm:$0xff]   ;;  %v5419_v14 = vld [vmem:[%s6015_s25 + $0xb6c] ss:$16 sps:$4 sm:$0xff]  }
 0x1a7   : > { %3582 = vmatprep.subr.bf16.mxu0 %v5332_v15  ;;  %3926 = vmatprep.subr.bf16.mxu1 %v5335_v16  ;;  %v5414_v15 = vld [vmem:[%s6015_s25 + $0xb60] ss:$16 sps:$4 sm:$0xff]   ;;  %v5417_v16 = vld [vmem:[%s6015_s25 + $0xb68] ss:$16 sps:$4 sm:$0xff]  }
 0x1aa   : > { %3583 = vmatpush1.bf16.msra.mxu0 %v5330_v17  ;;  %3927 = vmatpush1.bf16.msra.mxu1 %v5333_v18  ;;  %v5422_v17 = vld [vmem:[%s6015_s25 + $0xb84] ss:$16 sps:$4 sm:$0xff]   ;;  %v5425_v18 = vld [vmem:[%s6015_s25 + $0xb8c] ss:$16 sps:$4 sm:$0xff]  }
 0x1ab   : > { %3584 = vmatprep.subr.bf16.mxu0 %v5338_v19  ;;  %3928 = vmatprep.subr.bf16.mxu1 %v5341_v20  ;;  %v5420_v19 = vld [vmem:[%s6015_s25 + $0xb80] ss:$16 sps:$4 sm:$0xff]   ;;  %v5423_v20 = vld [vmem:[%s6015_s25 + $0xb88] ss:$16 sps:$4 sm:$0xff]  }
 0x1ae   : > { %3585 = vmatpush1.bf16.msra.mxu0 %v5336_v21  ;;  %3929 = vmatpush1.bf16.msra.mxu1 %v5339_v22  ;;  %v5428_v21 = vld [vmem:[%s6015_s25 + $0xba4] ss:$16 sps:$4 sm:$0xff]   ;;  %v5431_v22 = vld [vmem:[%s6015_s25 + $0xbac] ss:$16 sps:$4 sm:$0xff]  }
 0x1af   : > { %3586 = vmatprep.subr.bf16.mxu0 %v5344_v23  ;;  %3930 = vmatprep.subr.bf16.mxu1 %v5347_v24  ;;  %v5426_v23 = vld [vmem:[%s6015_s25 + $0xba0] ss:$16 sps:$4 sm:$0xff]   ;;  %v5429_v24 = vld [vmem:[%s6015_s25 + $0xba8] ss:$16 sps:$4 sm:$0xff]  }
 0x1b2   : > { %3587 = vmatpush1.bf16.msra.mxu0 %v5342_v25  ;;  %3931 = vmatpush1.bf16.msra.mxu1 %v5345_v26  ;;  %v5434_v25 = vld [vmem:[%s6015_s25 + $0xbc4] ss:$16 sps:$4 sm:$0xff]   ;;  %v5437_v26 = vld [vmem:[%s6015_s25 + $0xbcc] ss:$16 sps:$4 sm:$0xff]  }
 0x1b3   : > { %3599 = vmatprep.subr.bf16.mxu0 %v5350_v27  ;;  %3943 = vmatprep.subr.bf16.mxu1 %v5353_v28  ;;  %v5432_v27 = vld [vmem:[%s6015_s25 + $0xbc0] ss:$16 sps:$4 sm:$0xff]   ;;  %v5435_v28 = vld [vmem:[%s6015_s25 + $0xbc8] ss:$16 sps:$4 sm:$0xff]  }
 0x1b5   : > { %3589 = vmatmul.mubr.bf16.vlgmr.msra.gmra.mrb[0].mxu0 %v282_v33  ;;  %3933 = vmatmul.mubr.bf16.vlgmr.msra.gmra.mrb[0].mxu1 %v282_v33  ;;  %v252_v33 = vld [vmem:[#allocation2 + $0x50] sm:$0xff] }
 0x1b6   : > { %3600 = vmatpush1.bf16.msra.mxu0 %v5348_v34  ;;  %3944 = vmatpush1.bf16.msra.mxu1 %v5351_v35  ;;  %v268_v34 = vld [vmem:[#allocation2 + $0xd0] sm:$0xff] }
 0x1b7   : > { %3601 = vmatprep.subr.bf16.mxu0 %v5356_v36  ;;  %3945 = vmatprep.subr.bf16.mxu1 %v5359_v37  ;;  %v5446_v35 = vld [vmem:[%s6015_s25 + $0xc04] ss:$16 sps:$4 sm:$0xff]   ;;  %v5449_v36 = vld [vmem:[%s6015_s25 + $0xc0c] ss:$16 sps:$4 sm:$0xff]   ;;  %v284_v37 = vpack.c.bf16 %v268_v34, %v252_v33  ;;  %v5528_v33 = vld [vmem:[%s6015_s25 + $0xdc0] ss:$16 sps:$4 sm:$0xff]  }
 0x1b8   : > { %3631 = vmatprep.mubr.bf16.mxu0 %v285_v38  ;;  %3975 = vmatprep.mubr.bf16.mxu1 %v285_v38  ;;  %v255_v38 = vld [vmem:[#allocation2 + $0x68] sm:$0xff] }
 0x1b9   : > { %v5531_v34 = vld [vmem:[%s6015_s25 + $0xdc8] ss:$16 sps:$4 sm:$0xff]  }
 0x1ba   : > { %3602 = vmatpush1.bf16.msra.mxu0 %v5354_v39  ;;  %3946 = vmatpush1.bf16.msra.mxu1 %v5357_v40  ;;  %v271_v39 = vld [vmem:[#allocation2 + $0xe8] sm:$0xff]  ;;  %v5444_v40 = vld [vmem:[%s6015_s25 + $0xc00] ss:$16 sps:$4 sm:$0xff]  }
 0x1bb   : > { %3603 = vmatprep.subr.bf16.mxu0 %v5362_v41  ;;  %3947 = vmatprep.subr.bf16.mxu1 %v5365_v42  ;;  %v5447_v41 = vld [vmem:[%s6015_s25 + $0xc08] ss:$16 sps:$4 sm:$0xff]   ;;  %v5452_v42 = vld [vmem:[%s6015_s25 + $0xc24] ss:$16 sps:$4 sm:$0xff]  }
 0x1be   : > { %3604 = vmatpush1.bf16.msra.mxu0 %v5360_v43  ;;  %3948 = vmatpush1.bf16.msra.mxu1 %v5363_v44  ;;  %v5455_v43 = vld [vmem:[%s6015_s25 + $0xc2c] ss:$16 sps:$4 sm:$0xff]   ;;  %v287_v44 = vpack.c.bf16 %v271_v39, %v255_v38  ;;  %v5537_v38 = vld [vmem:[%s6015_s25 + $0xde8] ss:$16 sps:$4 sm:$0xff]   ;;  %v254_v39 = vld [vmem:[#allocation2 + $0x60] sm:$0xff] }
 0x1bf   : > { %3605 = vmatprep.subr.bf16.mxu0 %v5368_v45  ;;  %3949 = vmatprep.subr.bf16.mxu1 %v5371_v46  ;;  %v5450_v45 = vld [vmem:[%s6015_s25 + $0xc20] ss:$16 sps:$4 sm:$0xff]   ;;  %v5453_v46 = vld [vmem:[%s6015_s25 + $0xc28] ss:$16 sps:$4 sm:$0xff]  }
 0x1c2   : > { %3606 = vmatpush1.bf16.msra.mxu0 %v5366_v47  ;;  %3950 = vmatpush1.bf16.msra.mxu1 %v5369_v48  ;;  %v5458_v47 = vld [vmem:[%s6015_s25 + $0xc44] ss:$16 sps:$4 sm:$0xff]   ;;  %v5461_v48 = vld [vmem:[%s6015_s25 + $0xc4c] ss:$16 sps:$4 sm:$0xff]  }
 0x1c3   : > { %3607 = vmatprep.subr.bf16.mxu0 %v5374_v49  ;;  %3951 = vmatprep.subr.bf16.mxu1 %v5377_v50  ;;  %v5456_v49 = vld [vmem:[%s6015_s25 + $0xc40] ss:$16 sps:$4 sm:$0xff]   ;;  %v5459_v50 = vld [vmem:[%s6015_s25 + $0xc48] ss:$16 sps:$4 sm:$0xff]  }
 0x1c6   : > { %3608 = vmatpush1.bf16.msra.mxu0 %v5372_v51  ;;  %3952 = vmatpush1.bf16.msra.mxu1 %v5375_v52  ;;  %v5464_v51 = vld [vmem:[%s6015_s25 + $0xc64] ss:$16 sps:$4 sm:$0xff]   ;;  %v5467_v52 = vld [vmem:[%s6015_s25 + $0xc6c] ss:$16 sps:$4 sm:$0xff]  }
 0x1c7   : > { %3609 = vmatprep.subr.bf16.mxu0 %v5380_v53  ;;  %3953 = vmatprep.subr.bf16.mxu1 %v5383_v54  ;;  %v5462_v53 = vld [vmem:[%s6015_s25 + $0xc60] ss:$16 sps:$4 sm:$0xff]   ;;  %v5465_v54 = vld [vmem:[%s6015_s25 + $0xc68] ss:$16 sps:$4 sm:$0xff]  }
 0x1ca   : > { %3610 = vmatpush1.bf16.msra.mxu0 %v5378_v55  ;;  %3954 = vmatpush1.bf16.msra.mxu1 %v5381_v56  ;;  %v5470_v55 = vld [vmem:[%s6015_s25 + $0xc84] ss:$16 sps:$4 sm:$0xff]   ;;  %v5473_v56 = vld [vmem:[%s6015_s25 + $0xc8c] ss:$16 sps:$4 sm:$0xff]  }
 0x1cb   : > { %3611 = vmatprep.subr.bf16.mxu0 %v5386_v57  ;;  %3955 = vmatprep.subr.bf16.mxu1 %v5389_v58  ;;  %v5468_v57 = vld [vmem:[%s6015_s25 + $0xc80] ss:$16 sps:$4 sm:$0xff]   ;;  %v5471_v58 = vld [vmem:[%s6015_s25 + $0xc88] ss:$16 sps:$4 sm:$0xff]  }
 0x1ce   : > { %3612 = vmatpush1.bf16.msra.mxu0 %v5384_v59  ;;  %3956 = vmatpush1.bf16.msra.mxu1 %v5387_v60  ;;  %v5476_v59 = vld [vmem:[%s6015_s25 + $0xca4] ss:$16 sps:$4 sm:$0xff]   ;;  %v5479_v60 = vld [vmem:[%s6015_s25 + $0xcac] ss:$16 sps:$4 sm:$0xff]  }
 0x1cf   : > { %3613 = vmatprep.subr.bf16.mxu0 %v5392_v61  ;;  %3957 = vmatprep.subr.bf16.mxu1 %v5395_v62  ;;  %v5474_v61 = vld [vmem:[%s6015_s25 + $0xca0] ss:$16 sps:$4 sm:$0xff]   ;;  %v5477_v62 = vld [vmem:[%s6015_s25 + $0xca8] ss:$16 sps:$4 sm:$0xff]  }
 0x1d2   : > { %3614 = vmatpush1.bf16.msra.mxu0 %v5390_v63  ;;  %3958 = vmatpush1.bf16.msra.mxu1 %v5393_v0  ;;  %v5482_v63 = vld [vmem:[%s6015_s25 + $0xcc4] ss:$16 sps:$4 sm:$0xff]   ;;  %v5485_v0 = vld [vmem:[%s6015_s25 + $0xccc] ss:$16 sps:$4 sm:$0xff]  }
 0x1d3   : > { %3615 = vmatprep.subr.bf16.mxu0 %v5398_v1  ;;  %3959 = vmatprep.subr.bf16.mxu1 %v5401_v2  ;;  %v5480_v1 = vld [vmem:[%s6015_s25 + $0xcc0] ss:$16 sps:$4 sm:$0xff]   ;;  %v5483_v2 = vld [vmem:[%s6015_s25 + $0xcc8] ss:$16 sps:$4 sm:$0xff]  }
 0x1d6   : > { %3616 = vmatpush1.bf16.msra.mxu0 %v5396_v3  ;;  %3960 = vmatpush1.bf16.msra.mxu1 %v5399_v4  ;;  %v5488_v3 = vld [vmem:[%s6015_s25 + $0xce4] ss:$16 sps:$4 sm:$0xff]   ;;  %v5491_v4 = vld [vmem:[%s6015_s25 + $0xcec] ss:$16 sps:$4 sm:$0xff]  }
 0x1d7   : > { %3617 = vmatprep.subr.bf16.mxu0 %v5404_v5  ;;  %3961 = vmatprep.subr.bf16.mxu1 %v5407_v6  ;;  %v5486_v5 = vld [vmem:[%s6015_s25 + $0xce0] ss:$16 sps:$4 sm:$0xff]   ;;  %v5489_v6 = vld [vmem:[%s6015_s25 + $0xce8] ss:$16 sps:$4 sm:$0xff]  }
 0x1da   : > { %3618 = vmatpush1.bf16.msra.mxu0 %v5402_v7  ;;  %3962 = vmatpush1.bf16.msra.mxu1 %v5405_v8  ;;  %v5494_v7 = vld [vmem:[%s6015_s25 + $0xd04] ss:$16 sps:$4 sm:$0xff]   ;;  %v5497_v8 = vld [vmem:[%s6015_s25 + $0xd0c] ss:$16 sps:$4 sm:$0xff]  }
 0x1db   : > { %3619 = vmatprep.subr.bf16.mxu0 %v5410_v9  ;;  %3963 = vmatprep.subr.bf16.mxu1 %v5413_v10  ;;  %v5492_v9 = vld [vmem:[%s6015_s25 + $0xd00] ss:$16 sps:$4 sm:$0xff]   ;;  %v5495_v10 = vld [vmem:[%s6015_s25 + $0xd08] ss:$16 sps:$4 sm:$0xff]  }
 0x1de   : > { %3620 = vmatpush1.bf16.msra.mxu0 %v5408_v11  ;;  %3964 = vmatpush1.bf16.msra.mxu1 %v5411_v12  ;;  %v5500_v11 = vld [vmem:[%s6015_s25 + $0xd24] ss:$16 sps:$4 sm:$0xff]   ;;  %v5503_v12 = vld [vmem:[%s6015_s25 + $0xd2c] ss:$16 sps:$4 sm:$0xff]  }
 0x1df   : > { %3621 = vmatprep.subr.bf16.mxu0 %v5416_v13  ;;  %3965 = vmatprep.subr.bf16.mxu1 %v5419_v14  ;;  %v5498_v13 = vld [vmem:[%s6015_s25 + $0xd20] ss:$16 sps:$4 sm:$0xff]   ;;  %v5501_v14 = vld [vmem:[%s6015_s25 + $0xd28] ss:$16 sps:$4 sm:$0xff]  }
 0x1e2   : > { %3622 = vmatpush1.bf16.msra.mxu0 %v5414_v15  ;;  %3966 = vmatpush1.bf16.msra.mxu1 %v5417_v16  ;;  %v5506_v15 = vld [vmem:[%s6015_s25 + $0xd44] ss:$16 sps:$4 sm:$0xff]   ;;  %v5509_v16 = vld [vmem:[%s6015_s25 + $0xd4c] ss:$16 sps:$4 sm:$0xff]  }
 0x1e3   : > { %3623 = vmatprep.subr.bf16.mxu0 %v5422_v17  ;;  %3967 = vmatprep.subr.bf16.mxu1 %v5425_v18  ;;  %v5504_v17 = vld [vmem:[%s6015_s25 + $0xd40] ss:$16 sps:$4 sm:$0xff]   ;;  %v5507_v18 = vld [vmem:[%s6015_s25 + $0xd48] ss:$16 sps:$4 sm:$0xff]  }
 0x1e6   : > { %3624 = vmatpush1.bf16.msra.mxu0 %v5420_v19  ;;  %3968 = vmatpush1.bf16.msra.mxu1 %v5423_v20  ;;  %v5512_v19 = vld [vmem:[%s6015_s25 + $0xd64] ss:$16 sps:$4 sm:$0xff]   ;;  %v5515_v20 = vld [vmem:[%s6015_s25 + $0xd6c] ss:$16 sps:$4 sm:$0xff]  }
 0x1e7   : > { %3625 = vmatprep.subr.bf16.mxu0 %v5428_v21  ;;  %3969 = vmatprep.subr.bf16.mxu1 %v5431_v22  ;;  %v5510_v21 = vld [vmem:[%s6015_s25 + $0xd60] ss:$16 sps:$4 sm:$0xff]   ;;  %v5513_v22 = vld [vmem:[%s6015_s25 + $0xd68] ss:$16 sps:$4 sm:$0xff]  }
 0x1ea   : > { %3626 = vmatpush1.bf16.msra.mxu0 %v5426_v23  ;;  %3970 = vmatpush1.bf16.msra.mxu1 %v5429_v24  ;;  %v5518_v23 = vld [vmem:[%s6015_s25 + $0xd84] ss:$16 sps:$4 sm:$0xff]   ;;  %v5521_v24 = vld [vmem:[%s6015_s25 + $0xd8c] ss:$16 sps:$4 sm:$0xff]  }
 0x1eb   : > { %3627 = vmatprep.subr.bf16.mxu0 %v5434_v25  ;;  %3971 = vmatprep.subr.bf16.mxu1 %v5437_v26  ;;  %v5516_v25 = vld [vmem:[%s6015_s25 + $0xd80] ss:$16 sps:$4 sm:$0xff]   ;;  %v5519_v26 = vld [vmem:[%s6015_s25 + $0xd88] ss:$16 sps:$4 sm:$0xff]  }
 0x1ee   : > { %3628 = vmatpush1.bf16.msra.mxu0 %v5432_v27  ;;  %3972 = vmatpush1.bf16.msra.mxu1 %v5435_v28  ;;  %v5524_v27 = vld [vmem:[%s6015_s25 + $0xda4] ss:$16 sps:$4 sm:$0xff]   ;;  %v5527_v28 = vld [vmem:[%s6015_s25 + $0xdac] ss:$16 sps:$4 sm:$0xff]  }
 0x1ef   : > { %3629 = vmatprep.subr.bf16.mxu0 %v5440_v29  ;;  %3973 = vmatprep.subr.bf16.mxu1 %v5443_v30  ;;  %v5522_v29 = vld [vmem:[%s6015_s25 + $0xda0] ss:$16 sps:$4 sm:$0xff]   ;;  %v5525_v30 = vld [vmem:[%s6015_s25 + $0xda8] ss:$16 sps:$4 sm:$0xff]  }
 0x1f2   : > { %3630 = vmatpush1.bf16.msra.mxu0 %v5438_v31  ;;  %3974 = vmatpush1.bf16.msra.mxu1 %v5441_v32  ;;  %v5530_v31 = vld [vmem:[%s6015_s25 + $0xdc4] ss:$16 sps:$4 sm:$0xff]   ;;  %v5533_v32 = vld [vmem:[%s6015_s25 + $0xdcc] ss:$16 sps:$4 sm:$0xff]  }
 0x1f3   : > { %3642 = vmatprep.subr.bf16.mxu0 %v5446_v35  ;;  %3986 = vmatprep.subr.bf16.mxu1 %v5449_v36  ;;  %v5536_v35 = vld [vmem:[%s6015_s25 + $0xde4] ss:$16 sps:$4 sm:$0xff]   ;;  %v5539_v36 = vld [vmem:[%s6015_s25 + $0xdec] ss:$16 sps:$4 sm:$0xff]  }
 0x1f5   : > { %3632 = vmatmul.mubr.bf16.vlgmr.msra.gmra.mrb[0].mxu0 %v284_v37  ;;  %3976 = vmatmul.mubr.bf16.vlgmr.msra.gmra.mrb[0].mxu1 %v284_v37  ;;  %v5534_v37 = vld [vmem:[%s6015_s25 + $0xde0] ss:$16 sps:$4 sm:$0xff]  }
 0x1f6   : > { %3643 = vmatpush1.bf16.msra.mxu0 %v5444_v40  ;;  %3987 = vmatpush1.bf16.msra.mxu1 %v5447_v41  ;;  %v270_v40 = vld [vmem:[#allocation2 + $0xe0] sm:$0xff] }
 0x1f7   : > { %3644 = vmatprep.subr.bf16.mxu0 %v5452_v42  ;;  %3988 = vmatprep.subr.bf16.mxu1 %v5455_v43  ;;  %v5542_v41 = vld [vmem:[%s6015_s25 + $0xe04] ss:$16 sps:$4 sm:$0xff]   ;;  %v5545_v42 = vld [vmem:[%s6015_s25 + $0xe0c] ss:$16 sps:$4 sm:$0xff]   ;;  %v286_v43 = vpack.c.bf16 %v270_v40, %v254_v39  ;;  %v5624_v39 = vld [vmem:[%s6015_s25 + $0xfc0] ss:$16 sps:$4 sm:$0xff]  }
 0x1f8   : > { %3674 = vmatprep.mubr.bf16.mxu0 %v287_v44  ;;  %4018 = vmatprep.mubr.bf16.mxu1 %v287_v44  ;;  %v257_v44 = vld [vmem:[#allocation2 + $0x78] sm:$0xff] }
 0x1f9   : > { %v5627_v40 = vld [vmem:[%s6015_s25 + $0xfc8] ss:$16 sps:$4 sm:$0xff]  }
 0x1fa   : > { %3645 = vmatpush1.bf16.msra.mxu0 %v5450_v45  ;;  %3989 = vmatpush1.bf16.msra.mxu1 %v5453_v46  ;;  %v273_v45 = vld [vmem:[#allocation2 + $0xf8] sm:$0xff]  ;;  %v5540_v46 = vld [vmem:[%s6015_s25 + $0xe00] ss:$16 sps:$4 sm:$0xff]  }
 0x1fb   : > { %3646 = vmatprep.subr.bf16.mxu0 %v5458_v47  ;;  %3990 = vmatprep.subr.bf16.mxu1 %v5461_v48  ;;  %v5543_v47 = vld [vmem:[%s6015_s25 + $0xe08] ss:$16 sps:$4 sm:$0xff]   ;;  %v5548_v48 = vld [vmem:[%s6015_s25 + $0xe24] ss:$16 sps:$4 sm:$0xff]  }
 0x1fe   : > { %3647 = vmatpush1.bf16.msra.mxu0 %v5456_v49  ;;  %3991 = vmatpush1.bf16.msra.mxu1 %v5459_v50  ;;  %v5551_v49 = vld [vmem:[%s6015_s25 + $0xe2c] ss:$16 sps:$4 sm:$0xff]   ;;  %v289_v50 = vpack.c.bf16 %v273_v45, %v257_v44  ;;  %v5633_v44 = vld [vmem:[%s6015_s25 + $0xfe8] ss:$16 sps:$4 sm:$0xff]   ;;  %v256_v45 = vld [vmem:[#allocation2 + $0x70] sm:$0xff] }
 0x1ff   : > { %3648 = vmatprep.subr.bf16.mxu0 %v5464_v51  ;;  %3992 = vmatprep.subr.bf16.mxu1 %v5467_v52  ;;  %v5546_v51 = vld [vmem:[%s6015_s25 + $0xe20] ss:$16 sps:$4 sm:$0xff]   ;;  %v5549_v52 = vld [vmem:[%s6015_s25 + $0xe28] ss:$16 sps:$4 sm:$0xff]  }
 0x202   : > { %3649 = vmatpush1.bf16.msra.mxu0 %v5462_v53  ;;  %3993 = vmatpush1.bf16.msra.mxu1 %v5465_v54  ;;  %v5554_v53 = vld [vmem:[%s6015_s25 + $0xe44] ss:$16 sps:$4 sm:$0xff]   ;;  %v5557_v54 = vld [vmem:[%s6015_s25 + $0xe4c] ss:$16 sps:$4 sm:$0xff]  }
 0x203   : > { %3650 = vmatprep.subr.bf16.mxu0 %v5470_v55  ;;  %3994 = vmatprep.subr.bf16.mxu1 %v5473_v56  ;;  %v5552_v55 = vld [vmem:[%s6015_s25 + $0xe40] ss:$16 sps:$4 sm:$0xff]   ;;  %v5555_v56 = vld [vmem:[%s6015_s25 + $0xe48] ss:$16 sps:$4 sm:$0xff]  }
 0x206   : > { %3651 = vmatpush1.bf16.msra.mxu0 %v5468_v57  ;;  %3995 = vmatpush1.bf16.msra.mxu1 %v5471_v58  ;;  %v5560_v57 = vld [vmem:[%s6015_s25 + $0xe64] ss:$16 sps:$4 sm:$0xff]   ;;  %v5563_v58 = vld [vmem:[%s6015_s25 + $0xe6c] ss:$16 sps:$4 sm:$0xff]  }
 0x207   : > { %3652 = vmatprep.subr.bf16.mxu0 %v5476_v59  ;;  %3996 = vmatprep.subr.bf16.mxu1 %v5479_v60  ;;  %v5558_v59 = vld [vmem:[%s6015_s25 + $0xe60] ss:$16 sps:$4 sm:$0xff]   ;;  %v5561_v60 = vld [vmem:[%s6015_s25 + $0xe68] ss:$16 sps:$4 sm:$0xff]  }
 0x20a   : > { %3653 = vmatpush1.bf16.msra.mxu0 %v5474_v61  ;;  %3997 = vmatpush1.bf16.msra.mxu1 %v5477_v62  ;;  %v5566_v61 = vld [vmem:[%s6015_s25 + $0xe84] ss:$16 sps:$4 sm:$0xff]   ;;  %v5569_v62 = vld [vmem:[%s6015_s25 + $0xe8c] ss:$16 sps:$4 sm:$0xff]  }
 0x20b   : > { %3654 = vmatprep.subr.bf16.mxu0 %v5482_v63  ;;  %3998 = vmatprep.subr.bf16.mxu1 %v5485_v0  ;;  %v5564_v63 = vld [vmem:[%s6015_s25 + $0xe80] ss:$16 sps:$4 sm:$0xff]   ;;  %v5567_v0 = vld [vmem:[%s6015_s25 + $0xe88] ss:$16 sps:$4 sm:$0xff]  }
 0x20e   : > { %3655 = vmatpush1.bf16.msra.mxu0 %v5480_v1  ;;  %3999 = vmatpush1.bf16.msra.mxu1 %v5483_v2  ;;  %v5572_v1 = vld [vmem:[%s6015_s25 + $0xea4] ss:$16 sps:$4 sm:$0xff]   ;;  %v5575_v2 = vld [vmem:[%s6015_s25 + $0xeac] ss:$16 sps:$4 sm:$0xff]  }
 0x20f   : > { %3656 = vmatprep.subr.bf16.mxu0 %v5488_v3  ;;  %4000 = vmatprep.subr.bf16.mxu1 %v5491_v4  ;;  %v5570_v3 = vld [vmem:[%s6015_s25 + $0xea0] ss:$16 sps:$4 sm:$0xff]   ;;  %v5573_v4 = vld [vmem:[%s6015_s25 + $0xea8] ss:$16 sps:$4 sm:$0xff]  }
 0x212   : > { %3657 = vmatpush1.bf16.msra.mxu0 %v5486_v5  ;;  %4001 = vmatpush1.bf16.msra.mxu1 %v5489_v6  ;;  %v5578_v5 = vld [vmem:[%s6015_s25 + $0xec4] ss:$16 sps:$4 sm:$0xff]   ;;  %v5581_v6 = vld [vmem:[%s6015_s25 + $0xecc] ss:$16 sps:$4 sm:$0xff]  }
 0x213   : > { %3658 = vmatprep.subr.bf16.mxu0 %v5494_v7  ;;  %4002 = vmatprep.subr.bf16.mxu1 %v5497_v8  ;;  %v5576_v7 = vld [vmem:[%s6015_s25 + $0xec0] ss:$16 sps:$4 sm:$0xff]   ;;  %v5579_v8 = vld [vmem:[%s6015_s25 + $0xec8] ss:$16 sps:$4 sm:$0xff]  }
 0x216   : > { %3659 = vmatpush1.bf16.msra.mxu0 %v5492_v9  ;;  %4003 = vmatpush1.bf16.msra.mxu1 %v5495_v10  ;;  %v5584_v9 = vld [vmem:[%s6015_s25 + $0xee4] ss:$16 sps:$4 sm:$0xff]   ;;  %v5587_v10 = vld [vmem:[%s6015_s25 + $0xeec] ss:$16 sps:$4 sm:$0xff]  }
 0x217   : > { %3660 = vmatprep.subr.bf16.mxu0 %v5500_v11  ;;  %4004 = vmatprep.subr.bf16.mxu1 %v5503_v12  ;;  %v5582_v11 = vld [vmem:[%s6015_s25 + $0xee0] ss:$16 sps:$4 sm:$0xff]   ;;  %v5585_v12 = vld [vmem:[%s6015_s25 + $0xee8] ss:$16 sps:$4 sm:$0xff]  }
 0x21a   : > { %3661 = vmatpush1.bf16.msra.mxu0 %v5498_v13  ;;  %4005 = vmatpush1.bf16.msra.mxu1 %v5501_v14  ;;  %v5590_v13 = vld [vmem:[%s6015_s25 + $0xf04] ss:$16 sps:$4 sm:$0xff]   ;;  %v5593_v14 = vld [vmem:[%s6015_s25 + $0xf0c] ss:$16 sps:$4 sm:$0xff]  }
 0x21b   : > { %3662 = vmatprep.subr.bf16.mxu0 %v5506_v15  ;;  %4006 = vmatprep.subr.bf16.mxu1 %v5509_v16  ;;  %v5588_v15 = vld [vmem:[%s6015_s25 + $0xf00] ss:$16 sps:$4 sm:$0xff]   ;;  %v5591_v16 = vld [vmem:[%s6015_s25 + $0xf08] ss:$16 sps:$4 sm:$0xff]  }
 0x21e   : > { %3663 = vmatpush1.bf16.msra.mxu0 %v5504_v17  ;;  %4007 = vmatpush1.bf16.msra.mxu1 %v5507_v18  ;;  %v5596_v17 = vld [vmem:[%s6015_s25 + $0xf24] ss:$16 sps:$4 sm:$0xff]   ;;  %v5599_v18 = vld [vmem:[%s6015_s25 + $0xf2c] ss:$16 sps:$4 sm:$0xff]  }
 0x21f   : > { %3664 = vmatprep.subr.bf16.mxu0 %v5512_v19  ;;  %4008 = vmatprep.subr.bf16.mxu1 %v5515_v20  ;;  %v5594_v19 = vld [vmem:[%s6015_s25 + $0xf20] ss:$16 sps:$4 sm:$0xff]   ;;  %v5597_v20 = vld [vmem:[%s6015_s25 + $0xf28] ss:$16 sps:$4 sm:$0xff]  }
 0x222   : > { %3665 = vmatpush1.bf16.msra.mxu0 %v5510_v21  ;;  %4009 = vmatpush1.bf16.msra.mxu1 %v5513_v22  ;;  %v5602_v21 = vld [vmem:[%s6015_s25 + $0xf44] ss:$16 sps:$4 sm:$0xff]   ;;  %v5605_v22 = vld [vmem:[%s6015_s25 + $0xf4c] ss:$16 sps:$4 sm:$0xff]  }
 0x223   : > { %3666 = vmatprep.subr.bf16.mxu0 %v5518_v23  ;;  %4010 = vmatprep.subr.bf16.mxu1 %v5521_v24  ;;  %v5600_v23 = vld [vmem:[%s6015_s25 + $0xf40] ss:$16 sps:$4 sm:$0xff]   ;;  %v5603_v24 = vld [vmem:[%s6015_s25 + $0xf48] ss:$16 sps:$4 sm:$0xff]  }
 0x226   : > { %3667 = vmatpush1.bf16.msra.mxu0 %v5516_v25  ;;  %4011 = vmatpush1.bf16.msra.mxu1 %v5519_v26  ;;  %v5608_v25 = vld [vmem:[%s6015_s25 + $0xf64] ss:$16 sps:$4 sm:$0xff]   ;;  %v5611_v26 = vld [vmem:[%s6015_s25 + $0xf6c] ss:$16 sps:$4 sm:$0xff]  }
 0x227   : > { %3668 = vmatprep.subr.bf16.mxu0 %v5524_v27  ;;  %4012 = vmatprep.subr.bf16.mxu1 %v5527_v28  ;;  %v5606_v27 = vld [vmem:[%s6015_s25 + $0xf60] ss:$16 sps:$4 sm:$0xff]   ;;  %v5609_v28 = vld [vmem:[%s6015_s25 + $0xf68] ss:$16 sps:$4 sm:$0xff]  }
 0x22a   : > { %3669 = vmatpush1.bf16.msra.mxu0 %v5522_v29  ;;  %4013 = vmatpush1.bf16.msra.mxu1 %v5525_v30  ;;  %v5614_v29 = vld [vmem:[%s6015_s25 + $0xf84] ss:$16 sps:$4 sm:$0xff]   ;;  %v5617_v30 = vld [vmem:[%s6015_s25 + $0xf8c] ss:$16 sps:$4 sm:$0xff]  }
 0x22b   : > { %3670 = vmatprep.subr.bf16.mxu0 %v5530_v31  ;;  %4014 = vmatprep.subr.bf16.mxu1 %v5533_v32  ;;  %v5612_v31 = vld [vmem:[%s6015_s25 + $0xf80] ss:$16 sps:$4 sm:$0xff]   ;;  %v5615_v32 = vld [vmem:[%s6015_s25 + $0xf88] ss:$16 sps:$4 sm:$0xff]  }
 0x22e   : > { %3671 = vmatpush1.bf16.msra.mxu0 %v5528_v33  ;;  %4015 = vmatpush1.bf16.msra.mxu1 %v5531_v34  ;;  %v5620_v33 = vld [vmem:[%s6015_s25 + $0xfa4] ss:$16 sps:$4 sm:$0xff]   ;;  %v5623_v34 = vld [vmem:[%s6015_s25 + $0xfac] ss:$16 sps:$4 sm:$0xff]  }
 0x22f   : > { %3672 = vmatprep.subr.bf16.mxu0 %v5536_v35  ;;  %4016 = vmatprep.subr.bf16.mxu1 %v5539_v36  ;;  %v5618_v35 = vld [vmem:[%s6015_s25 + $0xfa0] ss:$16 sps:$4 sm:$0xff]   ;;  %v5621_v36 = vld [vmem:[%s6015_s25 + $0xfa8] ss:$16 sps:$4 sm:$0xff]  }
 0x232   : > { %3673 = vmatpush1.bf16.msra.mxu0 %v5534_v37  ;;  %4017 = vmatpush1.bf16.msra.mxu1 %v5537_v38  ;;  %v5626_v37 = vld [vmem:[%s6015_s25 + $0xfc4] ss:$16 sps:$4 sm:$0xff]   ;;  %v5629_v38 = vld [vmem:[%s6015_s25 + $0xfcc] ss:$16 sps:$4 sm:$0xff]  }
 0x233   : > { %3685 = vmatprep.subr.bf16.mxu0 %v5542_v41  ;;  %4029 = vmatprep.subr.bf16.mxu1 %v5545_v42  ;;  %v5632_v41 = vld [vmem:[%s6015_s25 + $0xfe4] ss:$16 sps:$4 sm:$0xff]   ;;  %v5635_v42 = vld [vmem:[%s6015_s25 + $0xfec] ss:$16 sps:$4 sm:$0xff]  }
 0x235   : > { %3675 = vmatmul.mubr.bf16.vlgmr.msra.gmra.mrb[0].mxu0 %v286_v43  ;;  %4019 = vmatmul.mubr.bf16.vlgmr.msra.gmra.mrb[0].mxu1 %v286_v43  ;;  %v5630_v43 = vld [vmem:[%s6015_s25 + $0xfe0] ss:$16 sps:$4 sm:$0xff]  }
 0x236   : > { %3686 = vmatpush1.bf16.msra.mxu0 %v5540_v46  ;;  %4030 = vmatpush1.bf16.msra.mxu1 %v5543_v47  ;;  %v272_v46 = vld [vmem:[#allocation2 + $0xf0] sm:$0xff] }
 0x237   : > { %3687 = vmatprep.subr.bf16.mxu0 %v5548_v48  ;;  %4031 = vmatprep.subr.bf16.mxu1 %v5551_v49  ;;  %v288_v47 = vpack.c.bf16 %v272_v46, %v256_v45  ;;  %v804_v48 = vlaneseq }
 0x238   : > { %3717 = vmatprep.mubr.bf16.mxu0 %v289_v50  ;;  %4061 = vmatprep.mubr.bf16.mxu1 %v289_v50 }
 0x239   : > { %v805_v49 = vshrl.u32 %v804_v48, 7 }
 0x23a   : > { %3688 = vmatpush1.bf16.msra.mxu0 %v5546_v51  ;;  %4032 = vmatpush1.bf16.msra.mxu1 %v5549_v52  ;;  %v802_v52 = vld [vmem:[%s211_s27] sm:$0xf] }
 0x23b   : > { %3689 = vmatprep.subr.bf16.mxu0 %v5554_v53  ;;  %4033 = vmatprep.subr.bf16.mxu1 %v5557_v54  ;;  %v806_v50 = vsub.s32 0, %v805_v49  ;;  %v814_v51 = vsub.s32 2, %v805_v49  ;;  %v810_v53 = vsub.s32 1, %v805_v49  ;;  %v818_v54 = vsub.s32 3, %v805_v49 }
 0x23e   : > { %3690 = vmatpush1.bf16.msra.mxu0 %v5552_v55  ;;  %4034 = vmatpush1.bf16.msra.mxu1 %v5555_v56  ;;  %v807_v55 = vrot.slane %v802_v52, %v806_v50  ;;  %v815_v56 = vrot.slane %v802_v52, %v814_v51 }
 0x23f   : > { %3691 = vmatprep.subr.bf16.mxu0 %v5560_v57  ;;  %4035 = vmatprep.subr.bf16.mxu1 %v5563_v58  ;;  %v811_v57 = vrot.slane %v802_v52, %v810_v53  ;;  %v819_v58 = vrot.slane %v802_v52, %v818_v54 }
 0x242   : > { %3692 = vmatpush1.bf16.msra.mxu0 %v5558_v59  ;;  %4036 = vmatpush1.bf16.msra.mxu1 %v5561_v60 }
 0x243   : > { %3693 = vmatprep.subr.bf16.mxu0 %v5566_v61  ;;  %4037 = vmatprep.subr.bf16.mxu1 %v5569_v62 }
 0x246   : > { %3694 = vmatpush1.bf16.msra.mxu0 %v5564_v63  ;;  %4038 = vmatpush1.bf16.msra.mxu1 %v5567_v0 }
 0x247   : > { %3695 = vmatprep.subr.bf16.mxu0 %v5572_v1  ;;  %4039 = vmatprep.subr.bf16.mxu1 %v5575_v2 }
 0x24a   : > { %3696 = vmatpush1.bf16.msra.mxu0 %v5570_v3  ;;  %4040 = vmatpush1.bf16.msra.mxu1 %v5573_v4 }
 0x24b   : > { %3697 = vmatprep.subr.bf16.mxu0 %v5578_v5  ;;  %4041 = vmatprep.subr.bf16.mxu1 %v5581_v6 }
 0x24e   : > { %3698 = vmatpush1.bf16.msra.mxu0 %v5576_v7  ;;  %4042 = vmatpush1.bf16.msra.mxu1 %v5579_v8 }
 0x24f   : > { %3699 = vmatprep.subr.bf16.mxu0 %v5584_v9  ;;  %4043 = vmatprep.subr.bf16.mxu1 %v5587_v10 }
 0x252   : > { %3700 = vmatpush1.bf16.msra.mxu0 %v5582_v11  ;;  %4044 = vmatpush1.bf16.msra.mxu1 %v5585_v12 }
 0x253   : > { %3701 = vmatprep.subr.bf16.mxu0 %v5590_v13  ;;  %4045 = vmatprep.subr.bf16.mxu1 %v5593_v14 }
 0x256   : > { %3702 = vmatpush1.bf16.msra.mxu0 %v5588_v15  ;;  %4046 = vmatpush1.bf16.msra.mxu1 %v5591_v16 }
 0x257   : > { %3703 = vmatprep.subr.bf16.mxu0 %v5596_v17  ;;  %4047 = vmatprep.subr.bf16.mxu1 %v5599_v18 }
 0x25a   : > { %3704 = vmatpush1.bf16.msra.mxu0 %v5594_v19  ;;  %4048 = vmatpush1.bf16.msra.mxu1 %v5597_v20 }
 0x25b   : > { %3705 = vmatprep.subr.bf16.mxu0 %v5602_v21  ;;  %4049 = vmatprep.subr.bf16.mxu1 %v5605_v22 }
 0x25e   : > { %3706 = vmatpush1.bf16.msra.mxu0 %v5600_v23  ;;  %4050 = vmatpush1.bf16.msra.mxu1 %v5603_v24 }
 0x25f   : > { %3707 = vmatprep.subr.bf16.mxu0 %v5608_v25  ;;  %4051 = vmatprep.subr.bf16.mxu1 %v5611_v26 }
 0x262   : > { %3708 = vmatpush1.bf16.msra.mxu0 %v5606_v27  ;;  %4052 = vmatpush1.bf16.msra.mxu1 %v5609_v28 }
 0x263   : > { %3709 = vmatprep.subr.bf16.mxu0 %v5614_v29  ;;  %4053 = vmatprep.subr.bf16.mxu1 %v5617_v30 }
 0x266   : > { %3710 = vmatpush1.bf16.msra.mxu0 %v5612_v31  ;;  %4054 = vmatpush1.bf16.msra.mxu1 %v5615_v32 }
 0x267   : > { %3711 = vmatprep.subr.bf16.mxu0 %v5620_v33  ;;  %4055 = vmatprep.subr.bf16.mxu1 %v5623_v34 }
 0x26a   : > { %3712 = vmatpush1.bf16.msra.mxu0 %v5618_v35  ;;  %4056 = vmatpush1.bf16.msra.mxu1 %v5621_v36 }
 0x26b   : > { %3713 = vmatprep.subr.bf16.mxu0 %v5626_v37  ;;  %4057 = vmatprep.subr.bf16.mxu1 %v5629_v38 }
 0x26e   : > { %3714 = vmatpush1.bf16.msra.mxu0 %v5624_v39  ;;  %4058 = vmatpush1.bf16.msra.mxu1 %v5627_v40 }
 0x26f   : > { %3715 = vmatprep.subr.bf16.mxu0 %v5632_v41  ;;  %4059 = vmatprep.subr.bf16.mxu1 %v5635_v42 }
 0x272   : > { %3716 = vmatpush1.bf16.msra.mxu0 %v5630_v43  ;;  %4060 = vmatpush1.bf16.msra.mxu1 %v5633_v44 }
 0x275   : > { %3718 = vmatmul.mubr.bf16.vlgmr.msra.gmra.mrb[0].mxu0 %v288_v47  ;;  %4062 = vmatmul.mubr.bf16.vlgmr.msra.gmra.mrb[0].mxu1 %v288_v47 }
 0x348   : > { %v3719_v59 = vpop.f32.mrb[0].mxu0  ;;  %v4063_v60 = vpop.f32.mrb[0].mxu1 }
 0x349   : > { %v4734_v61 = vadd.f32 %v3719_v59, %v807_v55  ;;  %v4738_v62 = vadd.f32 %v4063_v60, %v815_v56  ;;  %v3721_v63 = vpop.f32.mrb[1].mxu0  ;;  %v4065_v0 = vpop.f32.mrb[1].mxu1 }
 0x34a   : > { %v4735_v1 = vadd.f32 %v3721_v63, %v811_v57  ;;  %v4739_v2 = vadd.f32 %v4065_v0, %v819_v58  ;;  %v3723_v3 = vpop.f32.mrb[2].mxu0  ;;  %v4067_v4 = vpop.f32.mrb[2].mxu1 }
 0x34b   : > { %4072 = vst [vmem:[%s238_s17] sm:$0xff] %v4734_v61  ;;  %4074 = vst [vmem:[%s238_s17 + $0x10] sm:$0xff] %v4738_v62  ;;  %v4736_v5 = vadd.f32 %v3723_v3, %v807_v55  ;;  %v4740_v6 = vadd.f32 %v4067_v4, %v815_v56  ;;  %v3725_v7 = vpop.f32.mrb[3].mxu0  ;;  %v4069_v8 = vpop.f32.mrb[3].mxu1 }
 0x34c   : > { %4073 = vst [vmem:[%s238_s17 + $0x8] sm:$0xff] %v4735_v1  ;;  %4075 = vst [vmem:[%s238_s17 + $0x18] sm:$0xff] %v4739_v2  ;;  %v4737_v9 = vadd.f32 %v3725_v7, %v811_v57  ;;  %v4741_v10 = vadd.f32 %v4069_v8, %v819_v58 }
 0x34d   : > { %4076 = vst [vmem:[%s238_s17 + $0x20] sm:$0xff] %v4736_v5  ;;  %4078 = vst [vmem:[%s238_s17 + $0x30] sm:$0xff] %v4740_v6 }
 0x34e   : > { %4077 = vst [vmem:[%s238_s17 + $0x28] sm:$0xff] %v4737_v9  ;;  %4079 = vst [vmem:[%s238_s17 + $0x38] sm:$0xff] %v4741_v10 }
 0x34f   : > { %5737 = shalt.err (!%p5734_p6)
}
 0x350   : > { %s5738_s22 = scalar_lea.hbm %s6541_s11, 1024  ;;  %s5742_s25 = scalar_lea.hbm %s6587_s3, 6144 }
 0x351   : > { %p5739_p8 = scmp.ne.s32.totalorder %s6541_s11, %s5738_s22  ;;  %p5743_p9 = scmp.lt.u32.totalorder %s6541_s11, %s6587_s3 }
 0x352   : > { %p5744_p1 = scmp.lt.u32.totalorder %s5742_s25, %s5738_s22  ;;  %p5746_p2 = scmp.lt.u32.totalorder %s5738_s22, %s6541_s11 }
 0x353   : > { %p5740_p11 = pnand %p5739_p8, %p6608_p3 }
 0x354   : > { %p5745_p13 = por %p5744_p1, %p5743_p9 }
 0x355   : > { %p5741_p5 = pneg %p5740_p11 }
 0x356   : > { %p5747_p0 = por %p5746_p2, %p5745_p13 }
 0x358   : > { %p5748_p10 = pnand %p5747_p0, %p5741_p5 }
 0x35a   : > { %5751 = shalt.err (!%p5748_p10)
}
 0x35b   : > { %s5805_s4 = smov 512   ;;  %s5806_s17 = smov 3072  }
 0x35c   : > { %s5807_s5 = smov 32  }
 0x35d   : > { %4806 = dma.vmem_to_hbm [thread:$0]  (%p6608_p3), %s6536_s20, 1024, %s6541_s11, %s4081_s7, %s5805_s4, %s5806_s17, %s5807_s5  }
 0x35e PF: > { %p4826_p12 = scmp.ge.s32.totalorder %s5794_s15, 2  ;;  %s4109_s24 = sand.u32 1, %s5782_s12  }
 0x35f   : > { %p6609_p7 = scmp.ne.s32.totalorder %s6598_s28, 0  ;;  %s4110_s10 = scalar_lea.sflag [#allocation4], %s4109_s24 }
 0x361   : > { %p4820_p4 = pnand %p4826_p12, %p6609_p7 }
 0x363   : > { %5777 = dma.done.wait (!%p4820_p4), %s4110_s10, 1024  }
 0x364   : > { %5779 = vsyncadd (!%p4820_p4), %s4110_s10, 4294966272  ;;  %p17_p6 = scmp.ge.s32.totalorder %s5849_s16, 8   ;;  %s6610_s12 = smov %s5786_s13 }
 0x365   : > { %s6611_s13 = smov %s5790_s14  ;;  %s6612_s14 = smov %s5859_s19 }
 0x366   : > { %s6613_s15 = smov %s5849_s16  ;;  %19 = sbr.rel (!%p17_p6) target bundleno = 6 (0x6), region = 93 }
 0x36d   :  { %4115 = vsyncpa [#allocation3], 1 }
 0x36e   :  { %4117 = vsyncpa [#allocation3 + $0x1], 1 }
 0x36f   :  { %4118 = vsyncpa [#allocation6], 1 }
 0x370   :  { %4120 = vsyncpa [#allocation6 + $0x1], 1 }
 0x371   :  { %4121 = vsyncpa [#allocation4], 1 }
 0x372   :  { %4123 = vsyncpa [#allocation4 + $0x1], 1 }

</bundles_post_ra>
